<compile_context>
chip_gen: v7x
topology: tpu7x:2x2x1
jax: 0.10.0
libtpu: 0.0.40
codegen_flags: <defaults>
</compile_context>

<pallas_src>
import jax
import jax.numpy as jnp
import numpy as np
from jax.experimental import pallas as pl
from jax.experimental.pallas import tpu as pltpu


# ----------------------------------------------------------------------------
# Host-side weight folding helpers (run once per call, plain numpy)
# ----------------------------------------------------------------------------
def _row_shift_mats(H):
    """(2, H, H): [0] @ a gives a[h-1] (zero row 0), [1] @ a gives a[h+1]."""
    up = np.zeros((H, H), np.float32)
    dn = np.zeros((H, H), np.float32)
    for h in range(1, H):
        up[h, h - 1] = 1.0
        dn[h - 1, h] = 1.0
    return jnp.asarray(np.stack([up, dn]))


def _fold_sepconv_bn(wdw, wpw, scale, shift, W):
    """Fold depthwise(3x3,pad 1) + pointwise(1x1) + BN scale into 3 banded
    block matrices acting on lane-dense rows (H, W*Cin) -> (H, W*Cout)."""
    wdw = np.asarray(wdw, np.float32)              # (9, Cin), tap = dy*3+dx
    wpw = np.asarray(wpw, np.float32)              # (Cin, Cout)
    scale = np.asarray(scale, np.float32).reshape(-1)
    shift = np.asarray(shift, np.float32).reshape(-1)
    Cin, Cout = wpw.shape
    wcomb = np.zeros((3, W * Cin, W * Cout), np.float32)
    for dy in range(3):
        for dx in range(3):
            blk = (wdw[dy * 3 + dx][:, None] * wpw) * scale[None, :]
            sel = np.zeros((W, W), np.float32)     # input pixel -> output pixel
            for wo in range(W):
                wi = wo + dx - 1
                if 0 <= wi < W:
                    sel[wi, wo] = 1.0
            wcomb[dy] += np.kron(sel, blk)
    bias = np.tile(shift, W).reshape(1, W * Cout)
    return jnp.asarray(wcomb), jnp.asarray(bias)


def _pool_selectors(H, W, C, stride):
    """Selection matrices for 3x3 max pool, given stride, padding=1 (indices
    clamped to the valid range, which is exact for max with -inf padding)."""
    Ho = (H - 1) // stride + 1
    Wo = (W - 1) // stride + 1
    vsel = np.zeros((3, Ho, H), np.float32)
    ssel = np.zeros((3, W * C, Wo * C), np.float32)
    eye = np.eye(C, dtype=np.float32)
    for d in range(3):
        for ho in range(Ho):
            vsel[d, ho, min(max(stride * ho + d - 1, 0), H - 1)] = 1.0
        for wo in range(Wo):
            c = min(max(stride * wo + d - 1, 0), W - 1)
            ssel[d, c * C:(c + 1) * C, wo * C:(wo + 1) * C] = eye
    return jnp.asarray(vsel), jnp.asarray(ssel), Ho, Wo


def _fold_skip_bn(wskip, scale, shift, W, Wo, stride):
    """Fold the strided 1x1 skip conv + BN scale into one (W*Cin, Wo*Cout)
    matrix acting on lane-dense rows."""
    wskip = np.asarray(wskip, np.float32)          # (Cin, Cout)
    scale = np.asarray(scale, np.float32).reshape(-1)
    shift = np.asarray(shift, np.float32).reshape(-1)
    Cin, Cout = wskip.shape
    sel = np.zeros((W, Wo), np.float32)
    for wo in range(Wo):
        sel[stride * wo, wo] = 1.0
    wbig = np.kron(sel, wskip * scale[None, :])
    bias = np.tile(shift, Wo).reshape(1, Wo * Cout)
    return jnp.asarray(wbig), jnp.asarray(bias)


# ----------------------------------------------------------------------------
# The fused Block kernel (one batch element per grid step)
# ----------------------------------------------------------------------------
def _make_block_kernel(n_units, relu_flags, has_pool, has_skip):
    def kernel(*refs):
        o_ref = refs[-1]
        x_ref, hs_ref = refs[0], refs[1]
        pos = 2
        unit_refs = []
        for _ in range(n_units):
            unit_refs.append((refs[pos], refs[pos + 1]))
            pos += 2
        if has_pool:
            vsel_ref, ssel_ref = refs[pos], refs[pos + 1]
            pos += 2
        if has_skip:
            wsk_ref, bsk_ref = refs[pos], refs[pos + 1]
            pos += 2

        def dot(a, b):
            return jnp.dot(a, b, preferred_element_type=jnp.float32)

        x = x_ref[0]                       # (H, W*Cin), lane-dense

        # rep stack: [ReLU] -> depthwise3x3 + pointwise1x1 + BN, per unit
        y = x
        for (w_ref, b_ref), relu in zip(unit_refs, relu_flags):
            if relu:
                y = jnp.maximum(y, 0.0)
            up = dot(hs_ref[0], y)         # row-shifted copy: up[h] = y[h-1]
            dn = dot(hs_ref[1], y)         # dn[h] = y[h+1]
            y = (dot(up, w_ref[0]) + dot(y, w_ref[1]) + dot(dn, w_ref[2])
                 + b_ref[...])

        # 3x3 max pool, stride s, padding 1 (subsample happens in-kernel)
        if has_pool:
            v = dot(vsel_ref[0], y)
            v = jnp.maximum(v, dot(vsel_ref[1], y))
            v = jnp.maximum(v, dot(vsel_ref[2], y))
            p = dot(v, ssel_ref[0])
            p = jnp.maximum(p, dot(v, ssel_ref[1]))
            p = jnp.maximum(p, dot(v, ssel_ref[2]))
        else:
            p = y

        # skip branch (strided 1x1 conv + BN) fused with the residual add
        if has_skip:
            xs = dot(vsel_ref[1], x) if has_pool else x   # stride-s rows of inp
            p = p + dot(xs, wsk_ref[...]) + bsk_ref[...]
        else:
            p = p + x

        o_ref[0] = p
    return kernel


def block_forward(x, params, strides):
    """x: (N, H, W, Cin) NHWC float32."""
    N, H, W, Cin = x.shape
    units = params["units"]
    relu_flags = tuple(bool(u["relu"]) for u in units)
    has_pool = strides != 1
    has_skip = params["skip"] is not None

    ops = [x.reshape(N, H, W * Cin), _row_shift_mats(H)]
    in_specs = [pl.BlockSpec((1, H, W * Cin), lambda n: (n, 0, 0)),
                pl.BlockSpec((2, H, H), lambda n: (0, 0, 0))]

    Cout = Cin
    for u in units:
        Cout = u["wpw"].shape[1]
        wcomb, bias = _fold_sepconv_bn(u["wdw"], u["wpw"], u["scale"],
                                       u["shift"], W)
        ops += [wcomb, bias]
        in_specs += [pl.BlockSpec(wcomb.shape, lambda n: (0, 0, 0)),
                     pl.BlockSpec(bias.shape, lambda n: (0, 0))]

    if has_pool:
        vsel, ssel, Ho, Wo = _pool_selectors(H, W, Cout, strides)
        ops += [vsel, ssel]
        in_specs += [pl.BlockSpec(vsel.shape, lambda n: (0, 0, 0)),
                     pl.BlockSpec(ssel.shape, lambda n: (0, 0, 0))]
    else:
        Ho, Wo = H, W

    if has_skip:
        wsk, bsk = _fold_skip_bn(params["skip"]["w"], params["skip"]["scale"],
                                 params["skip"]["shift"], W, Wo, strides)
        ops += [wsk, bsk]
        in_specs += [pl.BlockSpec(wsk.shape, lambda n: (0, 0)),
                     pl.BlockSpec(bsk.shape, lambda n: (0, 0))]

    kernel = _make_block_kernel(len(units), relu_flags, has_pool, has_skip)
    out2d = pl.pallas_call(
        kernel,
        out_shape=jax.ShapeDtypeStruct((N, Ho, Wo * Cout), jnp.float32),
        grid_spec=pltpu.PrefetchScalarGridSpec(
            num_scalar_prefetch=0,
            grid=(N,),
            in_specs=in_specs,
            out_specs=pl.BlockSpec((1, Ho, Wo * Cout), lambda n: (n, 0, 0)),
        ),
        compiler_params=pltpu.CompilerParams(
            dimension_semantics=("parallel",)),   # v7x: one image per TC
    )(*ops)
    return out2d.reshape(N, Ho, Wo, Cout)


# ----------------------------------------------------------------------------
# Parameter construction (deterministic, mirrors Block.__init__ shapes)
# ----------------------------------------------------------------------------
def init_block_params(key, in_filters, out_filters, reps, strides,
                      start_with_relu, grow_first, eps=1e-5):
    keys = iter(jax.random.split(key, 64))

    def bn_scale_shift(c):
        gamma = 1.0 + 0.1 * jax.random.normal(next(keys), (c,), jnp.float32)
        beta = 0.1 * jax.random.normal(next(keys), (c,), jnp.float32)
        mean = 0.1 * jax.random.normal(next(keys), (c,), jnp.float32)
        var = jnp.abs(jax.random.normal(next(keys), (c,), jnp.float32)) + 0.5
        scale = gamma / jnp.sqrt(var + eps)
        shift = beta - mean * scale
        return scale.reshape(1, c), shift.reshape(1, c)

    dims = []
    filters = in_filters
    if grow_first:
        dims.append((in_filters, out_filters))
        filters = out_filters
    for _ in range(reps - 1):
        dims.append((filters, filters))
    if not grow_first:
        dims.append((in_filters, out_filters))

    units = []
    for idx, (cin, cout) in enumerate(dims):
        wdw = 0.2 * jax.random.normal(next(keys), (9, cin), jnp.float32)
        wpw = (cin ** -0.5) * jax.random.normal(next(keys), (cin, cout),
                                                jnp.float32)
        scale, shift = bn_scale_shift(cout)
        relu = True if idx > 0 else bool(start_with_relu)
        units.append(dict(wdw=wdw, wpw=wpw, scale=scale, shift=shift,
                          relu=relu))

    skip = None
    if out_filters != in_filters or strides != 1:
        wskip = (in_filters ** -0.5) * jax.random.normal(
            next(keys), (in_filters, out_filters), jnp.float32)
        s_scale, s_shift = bn_scale_shift(out_filters)
        skip = dict(w=wskip, scale=s_scale, shift=s_shift)

    return dict(units=units, skip=skip)


# ----------------------------------------------------------------------------
# Pure-JAX reference (eval-mode BatchNorm), for correctness checking
# ----------------------------------------------------------------------------
def reference_block(x, params, strides):
    y = x
    for u in params["units"]:
        if u["relu"]:
            y = jnp.maximum(y, 0.0)
        cin = u["wdw"].shape[1]
        wdw = u["wdw"].reshape(3, 3, 1, cin)
        y = jax.lax.conv_general_dilated(
            y, wdw, window_strides=(1, 1), padding=((1, 1), (1, 1)),
            dimension_numbers=("NHWC", "HWIO", "NHWC"),
            feature_group_count=cin)
        y = y @ u["wpw"]
        y = y * u["scale"] + u["shift"]
    if strides != 1:
        y = jax.lax.reduce_window(
            y, -jnp.inf, jax.lax.max,
            (1, 3, 3, 1), (1, strides, strides, 1),
            [(0, 0), (1, 1), (1, 1), (0, 0)])
    if params["skip"] is not None:
        s = x[:, ::strides, ::strides, :] @ params["skip"]["w"]
        s = s * params["skip"]["scale"] + params["skip"]["shift"]
        y = y + s
    else:
        y = y + x
    return y


if __name__ == "__main__":
    key = jax.random.PRNGKey(0)
    k_x, k_p = jax.random.split(key)

    N, H, W = 2, 16, 16
    in_filters, out_filters, reps, strides = 8, 16, 2, 2

    # NHWC input (corresponds to PyTorch NCHW [2, 8, 16, 16])
    x = jax.random.normal(k_x, (N, H, W, in_filters), jnp.float32)
    params = init_block_params(k_p, in_filters, out_filters, reps, strides,
                               start_with_relu=True, grow_first=True)

    out = block_forward(x, params, strides)
    out = jax.block_until_ready(out)

    ref = reference_block(x, params, strides)
    np.testing.assert_allclose(np.asarray(out), np.asarray(ref),
                               rtol=1e-2, atol=5e-2)

    print("KERNEL_OK")
</pallas_src>

<mosaic_0001>
module attributes {stable_mosaic.version = 11 : i64} {
  func.func @kernel(%arg0: i32, %arg1: memref<1x16x128xf32, #tpu.memory_space<vmem>>, %arg2: memref<2x16x16xf32, #tpu.memory_space<vmem>>, %arg3: memref<3x128x256xf32, #tpu.memory_space<vmem>>, %arg4: memref<1x256xf32, #tpu.memory_space<vmem>>, %arg5: memref<3x256x256xf32, #tpu.memory_space<vmem>>, %arg6: memref<1x256xf32, #tpu.memory_space<vmem>>, %arg7: memref<3x8x16xf32, #tpu.memory_space<vmem>>, %arg8: memref<3x256x128xf32, #tpu.memory_space<vmem>>, %arg9: memref<128x128xf32, #tpu.memory_space<vmem>>, %arg10: memref<1x128xf32, #tpu.memory_space<vmem>>, %arg11: memref<1x8x128xf32, #tpu.memory_space<vmem>>) attributes {dimension_semantics = [#tpu.dimension_semantics<parallel>], iteration_bounds = array<i64: 2>, scalar_prefetch = 0 : i64, scratch_operands = 0 : i64, tpu.core_type = #tpu.core_type<tc>, window_params = [{transform_indices = @transform_0, window_bounds = array<i64: 1, 16, 128>}, {pipeline_mode = #tpu.pipeline_mode<synchronous>, transform_indices = @transform_1, window_bounds = array<i64: 2, 16, 16>}, {pipeline_mode = #tpu.pipeline_mode<synchronous>, transform_indices = @transform_2, window_bounds = array<i64: 3, 128, 256>}, {pipeline_mode = #tpu.pipeline_mode<synchronous>, transform_indices = @transform_3, window_bounds = array<i64: 1, 256>}, {pipeline_mode = #tpu.pipeline_mode<synchronous>, transform_indices = @transform_4, window_bounds = array<i64: 3, 256, 256>}, {pipeline_mode = #tpu.pipeline_mode<synchronous>, transform_indices = @transform_5, window_bounds = array<i64: 1, 256>}, {pipeline_mode = #tpu.pipeline_mode<synchronous>, transform_indices = @transform_6, window_bounds = array<i64: 3, 8, 16>}, {pipeline_mode = #tpu.pipeline_mode<synchronous>, transform_indices = @transform_7, window_bounds = array<i64: 3, 256, 128>}, {pipeline_mode = #tpu.pipeline_mode<synchronous>, transform_indices = @transform_8, window_bounds = array<i64: 128, 128>}, {pipeline_mode = #tpu.pipeline_mode<synchronous>, transform_indices = @transform_9, window_bounds = array<i64: 1, 128>}, {transform_indices = @transform_10, window_bounds = array<i64: 1, 8, 128>}]} {
    %c0 = arith.constant 0 : index
    %c0_0 = arith.constant 0 : index
    %c0_1 = arith.constant 0 : index
    %0 = vector.load %arg1[%c0, %c0_0, %c0_1] : memref<1x16x128xf32, #tpu.memory_space<vmem>>, vector<1x16x128xf32>
    %1 = vector.shape_cast %0 : vector<1x16x128xf32> to vector<16x128xf32>
    %cst = arith.constant 0.000000e+00 : f32
    %2 = vector.broadcast %cst : f32 to vector<16x128xf32>
    %3 = arith.maximumf %1, %2 : vector<16x128xf32>
    %c0_2 = arith.constant 0 : index
    %c0_3 = arith.constant 0 : index
    %c0_4 = arith.constant 0 : index
    %4 = vector.load %arg2[%c0_2, %c0_3, %c0_4] : memref<2x16x16xf32, #tpu.memory_space<vmem>>, vector<1x16x16xf32>
    %5 = vector.shape_cast %4 : vector<1x16x16xf32> to vector<16x16xf32>
    %cst_5 = arith.constant dense<0.000000e+00> : vector<16x128xf32>
    %6 = tpu.matmul %5, %3, %cst_5 {dimension_numbers = #tpu.dot_dimension_numbers<[1], [0], [0], [1], [0, 0, 1, 1], [], []>} : vector<16x16xf32>, vector<16x128xf32>, vector<16x128xf32> -> vector<16x128xf32>
    %c1 = arith.constant 1 : index
    %c0_6 = arith.constant 0 : index
    %c0_7 = arith.constant 0 : index
    %7 = vector.load %arg2[%c1, %c0_6, %c0_7] : memref<2x16x16xf32, #tpu.memory_space<vmem>>, vector<1x16x16xf32>
    %8 = vector.shape_cast %7 : vector<1x16x16xf32> to vector<16x16xf32>
    %cst_8 = arith.constant dense<0.000000e+00> : vector<16x128xf32>
    %9 = tpu.matmul %8, %3, %cst_8 {dimension_numbers = #tpu.dot_dimension_numbers<[1], [0], [0], [1], [0, 0, 1, 1], [], []>} : vector<16x16xf32>, vector<16x128xf32>, vector<16x128xf32> -> vector<16x128xf32>
    %c0_9 = arith.constant 0 : index
    %c0_10 = arith.constant 0 : index
    %c0_11 = arith.constant 0 : index
    %10 = vector.load %arg3[%c0_9, %c0_10, %c0_11] : memref<3x128x256xf32, #tpu.memory_space<vmem>>, vector<1x128x256xf32>
    %11 = vector.shape_cast %10 : vector<1x128x256xf32> to vector<128x256xf32>
    %cst_12 = arith.constant dense<0.000000e+00> : vector<16x256xf32>
    %12 = tpu.matmul %6, %11, %cst_12 {dimension_numbers = #tpu.dot_dimension_numbers<[1], [0], [0], [1], [0, 0, 1, 1], [], []>} : vector<16x128xf32>, vector<128x256xf32>, vector<16x256xf32> -> vector<16x256xf32>
    %c1_13 = arith.constant 1 : index
    %c0_14 = arith.constant 0 : index
    %c0_15 = arith.constant 0 : index
    %13 = vector.load %arg3[%c1_13, %c0_14, %c0_15] : memref<3x128x256xf32, #tpu.memory_space<vmem>>, vector<1x128x256xf32>
    %14 = vector.shape_cast %13 : vector<1x128x256xf32> to vector<128x256xf32>
    %cst_16 = arith.constant dense<0.000000e+00> : vector<16x256xf32>
    %15 = tpu.matmul %3, %14, %cst_16 {dimension_numbers = #tpu.dot_dimension_numbers<[1], [0], [0], [1], [0, 0, 1, 1], [], []>} : vector<16x128xf32>, vector<128x256xf32>, vector<16x256xf32> -> vector<16x256xf32>
    %16 = arith.addf %12, %15 : vector<16x256xf32>
    %c2 = arith.constant 2 : index
    %c0_17 = arith.constant 0 : index
    %c0_18 = arith.constant 0 : index
    %17 = vector.load %arg3[%c2, %c0_17, %c0_18] : memref<3x128x256xf32, #tpu.memory_space<vmem>>, vector<1x128x256xf32>
    %18 = vector.shape_cast %17 : vector<1x128x256xf32> to vector<128x256xf32>
    %cst_19 = arith.constant dense<0.000000e+00> : vector<16x256xf32>
    %19 = tpu.matmul %9, %18, %cst_19 {dimension_numbers = #tpu.dot_dimension_numbers<[1], [0], [0], [1], [0, 0, 1, 1], [], []>} : vector<16x128xf32>, vector<128x256xf32>, vector<16x256xf32> -> vector<16x256xf32>
    %20 = arith.addf %16, %19 : vector<16x256xf32>
    %c0_20 = arith.constant 0 : index
    %c0_21 = arith.constant 0 : index
    %21 = vector.load %arg4[%c0_20, %c0_21] : memref<1x256xf32, #tpu.memory_space<vmem>>, vector<1x256xf32>
    %22 = vector.broadcast %21 : vector<1x256xf32> to vector<16x256xf32>
    %23 = arith.addf %20, %22 : vector<16x256xf32>
    %cst_22 = arith.constant 0.000000e+00 : f32
    %24 = vector.broadcast %cst_22 : f32 to vector<16x256xf32>
    %25 = arith.maximumf %23, %24 : vector<16x256xf32>
    %c0_23 = arith.constant 0 : index
    %c0_24 = arith.constant 0 : index
    %c0_25 = arith.constant 0 : index
    %26 = vector.load %arg2[%c0_23, %c0_24, %c0_25] : memref<2x16x16xf32, #tpu.memory_space<vmem>>, vector<1x16x16xf32>
    %27 = vector.shape_cast %26 : vector<1x16x16xf32> to vector<16x16xf32>
    %cst_26 = arith.constant dense<0.000000e+00> : vector<16x256xf32>
    %28 = tpu.matmul %27, %25, %cst_26 {dimension_numbers = #tpu.dot_dimension_numbers<[1], [0], [0], [1], [0, 0, 1, 1], [], []>} : vector<16x16xf32>, vector<16x256xf32>, vector<16x256xf32> -> vector<16x256xf32>
    %c1_27 = arith.constant 1 : index
    %c0_28 = arith.constant 0 : index
    %c0_29 = arith.constant 0 : index
    %29 = vector.load %arg2[%c1_27, %c0_28, %c0_29] : memref<2x16x16xf32, #tpu.memory_space<vmem>>, vector<1x16x16xf32>
    %30 = vector.shape_cast %29 : vector<1x16x16xf32> to vector<16x16xf32>
    %cst_30 = arith.constant dense<0.000000e+00> : vector<16x256xf32>
    %31 = tpu.matmul %30, %25, %cst_30 {dimension_numbers = #tpu.dot_dimension_numbers<[1], [0], [0], [1], [0, 0, 1, 1], [], []>} : vector<16x16xf32>, vector<16x256xf32>, vector<16x256xf32> -> vector<16x256xf32>
    %c0_31 = arith.constant 0 : index
    %c0_32 = arith.constant 0 : index
    %c0_33 = arith.constant 0 : index
    %32 = vector.load %arg5[%c0_31, %c0_32, %c0_33] : memref<3x256x256xf32, #tpu.memory_space<vmem>>, vector<1x256x256xf32>
    %33 = vector.shape_cast %32 : vector<1x256x256xf32> to vector<256x256xf32>
    %cst_34 = arith.constant dense<0.000000e+00> : vector<16x256xf32>
    %34 = tpu.matmul %28, %33, %cst_34 {dimension_numbers = #tpu.dot_dimension_numbers<[1], [0], [0], [1], [0, 0, 1, 1], [], []>} : vector<16x256xf32>, vector<256x256xf32>, vector<16x256xf32> -> vector<16x256xf32>
    %c1_35 = arith.constant 1 : index
    %c0_36 = arith.constant 0 : index
    %c0_37 = arith.constant 0 : index
    %35 = vector.load %arg5[%c1_35, %c0_36, %c0_37] : memref<3x256x256xf32, #tpu.memory_space<vmem>>, vector<1x256x256xf32>
    %36 = vector.shape_cast %35 : vector<1x256x256xf32> to vector<256x256xf32>
    %cst_38 = arith.constant dense<0.000000e+00> : vector<16x256xf32>
    %37 = tpu.matmul %25, %36, %cst_38 {dimension_numbers = #tpu.dot_dimension_numbers<[1], [0], [0], [1], [0, 0, 1, 1], [], []>} : vector<16x256xf32>, vector<256x256xf32>, vector<16x256xf32> -> vector<16x256xf32>
    %38 = arith.addf %34, %37 : vector<16x256xf32>
    %c2_39 = arith.constant 2 : index
    %c0_40 = arith.constant 0 : index
    %c0_41 = arith.constant 0 : index
    %39 = vector.load %arg5[%c2_39, %c0_40, %c0_41] : memref<3x256x256xf32, #tpu.memory_space<vmem>>, vector<1x256x256xf32>
    %40 = vector.shape_cast %39 : vector<1x256x256xf32> to vector<256x256xf32>
    %cst_42 = arith.constant dense<0.000000e+00> : vector<16x256xf32>
    %41 = tpu.matmul %31, %40, %cst_42 {dimension_numbers = #tpu.dot_dimension_numbers<[1], [0], [0], [1], [0, 0, 1, 1], [], []>} : vector<16x256xf32>, vector<256x256xf32>, vector<16x256xf32> -> vector<16x256xf32>
    %42 = arith.addf %38, %41 : vector<16x256xf32>
    %c0_43 = arith.constant 0 : index
    %c0_44 = arith.constant 0 : index
    %43 = vector.load %arg6[%c0_43, %c0_44] : memref<1x256xf32, #tpu.memory_space<vmem>>, vector<1x256xf32>
    %44 = vector.broadcast %43 : vector<1x256xf32> to vector<16x256xf32>
    %45 = arith.addf %42, %44 : vector<16x256xf32>
    %c0_45 = arith.constant 0 : index
    %c0_46 = arith.constant 0 : index
    %c0_47 = arith.constant 0 : index
    %46 = vector.load %arg7[%c0_45, %c0_46, %c0_47] : memref<3x8x16xf32, #tpu.memory_space<vmem>>, vector<1x8x16xf32>
    %47 = vector.shape_cast %46 : vector<1x8x16xf32> to vector<8x16xf32>
    %cst_48 = arith.constant dense<0.000000e+00> : vector<8x256xf32>
    %48 = tpu.matmul %47, %45, %cst_48 {dimension_numbers = #tpu.dot_dimension_numbers<[1], [0], [0], [1], [0, 0, 1, 1], [], []>} : vector<8x16xf32>, vector<16x256xf32>, vector<8x256xf32> -> vector<8x256xf32>
    %c1_49 = arith.constant 1 : index
    %c0_50 = arith.constant 0 : index
    %c0_51 = arith.constant 0 : index
    %49 = vector.load %arg7[%c1_49, %c0_50, %c0_51] : memref<3x8x16xf32, #tpu.memory_space<vmem>>, vector<1x8x16xf32>
    %50 = vector.shape_cast %49 : vector<1x8x16xf32> to vector<8x16xf32>
    %cst_52 = arith.constant dense<0.000000e+00> : vector<8x256xf32>
    %51 = tpu.matmul %50, %45, %cst_52 {dimension_numbers = #tpu.dot_dimension_numbers<[1], [0], [0], [1], [0, 0, 1, 1], [], []>} : vector<8x16xf32>, vector<16x256xf32>, vector<8x256xf32> -> vector<8x256xf32>
    %52 = arith.maximumf %48, %51 : vector<8x256xf32>
    %c2_53 = arith.constant 2 : index
    %c0_54 = arith.constant 0 : index
    %c0_55 = arith.constant 0 : index
    %53 = vector.load %arg7[%c2_53, %c0_54, %c0_55] : memref<3x8x16xf32, #tpu.memory_space<vmem>>, vector<1x8x16xf32>
    %54 = vector.shape_cast %53 : vector<1x8x16xf32> to vector<8x16xf32>
    %cst_56 = arith.constant dense<0.000000e+00> : vector<8x256xf32>
    %55 = tpu.matmul %54, %45, %cst_56 {dimension_numbers = #tpu.dot_dimension_numbers<[1], [0], [0], [1], [0, 0, 1, 1], [], []>} : vector<8x16xf32>, vector<16x256xf32>, vector<8x256xf32> -> vector<8x256xf32>
    %56 = arith.maximumf %52, %55 : vector<8x256xf32>
    %c0_57 = arith.constant 0 : index
    %c0_58 = arith.constant 0 : index
    %c0_59 = arith.constant 0 : index
    %57 = vector.load %arg8[%c0_57, %c0_58, %c0_59] : memref<3x256x128xf32, #tpu.memory_space<vmem>>, vector<1x256x128xf32>
    %58 = vector.shape_cast %57 : vector<1x256x128xf32> to vector<256x128xf32>
    %cst_60 = arith.constant dense<0.000000e+00> : vector<8x128xf32>
    %59 = tpu.matmul %56, %58, %cst_60 {dimension_numbers = #tpu.dot_dimension_numbers<[1], [0], [0], [1], [0, 0, 1, 1], [], []>} : vector<8x256xf32>, vector<256x128xf32>, vector<8x128xf32> -> vector<8x128xf32>
    %c1_61 = arith.constant 1 : index
    %c0_62 = arith.constant 0 : index
    %c0_63 = arith.constant 0 : index
    %60 = vector.load %arg8[%c1_61, %c0_62, %c0_63] : memref<3x256x128xf32, #tpu.memory_space<vmem>>, vector<1x256x128xf32>
    %61 = vector.shape_cast %60 : vector<1x256x128xf32> to vector<256x128xf32>
    %cst_64 = arith.constant dense<0.000000e+00> : vector<8x128xf32>
    %62 = tpu.matmul %56, %61, %cst_64 {dimension_numbers = #tpu.dot_dimension_numbers<[1], [0], [0], [1], [0, 0, 1, 1], [], []>} : vector<8x256xf32>, vector<256x128xf32>, vector<8x128xf32> -> vector<8x128xf32>
    %63 = arith.maximumf %59, %62 : vector<8x128xf32>
    %c2_65 = arith.constant 2 : index
    %c0_66 = arith.constant 0 : index
    %c0_67 = arith.constant 0 : index
    %64 = vector.load %arg8[%c2_65, %c0_66, %c0_67] : memref<3x256x128xf32, #tpu.memory_space<vmem>>, vector<1x256x128xf32>
    %65 = vector.shape_cast %64 : vector<1x256x128xf32> to vector<256x128xf32>
    %cst_68 = arith.constant dense<0.000000e+00> : vector<8x128xf32>
    %66 = tpu.matmul %56, %65, %cst_68 {dimension_numbers = #tpu.dot_dimension_numbers<[1], [0], [0], [1], [0, 0, 1, 1], [], []>} : vector<8x256xf32>, vector<256x128xf32>, vector<8x128xf32> -> vector<8x128xf32>
    %67 = arith.maximumf %63, %66 : vector<8x128xf32>
    %c1_69 = arith.constant 1 : index
    %c0_70 = arith.constant 0 : index
    %c0_71 = arith.constant 0 : index
    %68 = vector.load %arg7[%c1_69, %c0_70, %c0_71] : memref<3x8x16xf32, #tpu.memory_space<vmem>>, vector<1x8x16xf32>
    %69 = vector.shape_cast %68 : vector<1x8x16xf32> to vector<8x16xf32>
    %cst_72 = arith.constant dense<0.000000e+00> : vector<8x128xf32>
    %70 = tpu.matmul %69, %1, %cst_72 {dimension_numbers = #tpu.dot_dimension_numbers<[1], [0], [0], [1], [0, 0, 1, 1], [], []>} : vector<8x16xf32>, vector<16x128xf32>, vector<8x128xf32> -> vector<8x128xf32>
    %c0_73 = arith.constant 0 : index
    %c0_74 = arith.constant 0 : index
    %71 = vector.load %arg9[%c0_73, %c0_74] : memref<128x128xf32, #tpu.memory_space<vmem>>, vector<128x128xf32>
    %cst_75 = arith.constant dense<0.000000e+00> : vector<8x128xf32>
    %72 = tpu.matmul %70, %71, %cst_75 {dimension_numbers = #tpu.dot_dimension_numbers<[1], [0], [0], [1], [0, 0, 1, 1], [], []>} : vector<8x128xf32>, vector<128x128xf32>, vector<8x128xf32> -> vector<8x128xf32>
    %73 = arith.addf %67, %72 : vector<8x128xf32>
    %c0_76 = arith.constant 0 : index
    %c0_77 = arith.constant 0 : index
    %74 = vector.load %arg10[%c0_76, %c0_77] : memref<1x128xf32, #tpu.memory_space<vmem>>, vector<1x128xf32>
    %75 = vector.broadcast %74 : vector<1x128xf32> to vector<8x128xf32>
    %76 = arith.addf %73, %75 : vector<8x128xf32>
    %c0_78 = arith.constant 0 : index
    %c0_79 = arith.constant 0 : index
    %c0_80 = arith.constant 0 : index
    %77 = vector.load %arg11[%c0_78, %c0_79, %c0_80] : memref<1x8x128xf32, #tpu.memory_space<vmem>>, vector<1x8x128xf32>
    %78 = vector.shape_cast %77 : vector<1x8x128xf32> to vector<8x128xf32>
    %79 = vector.shape_cast %76 : vector<8x128xf32> to vector<1x8x128xf32>
    tpu.vector_store %arg11[%c0_78, %c0_79, %c0_80], %79 {strides = array<i32>} : memref<1x8x128xf32, #tpu.memory_space<vmem>>, vector<1x8x128xf32>,
    return
  }
  func.func @transform_0(%arg0: i32) -> (i32, i32, i32) {
    %c0_i32 = arith.constant 0 : i32
    %c0_i32_0 = arith.constant 0 : i32
    %c0_i32_1 = arith.constant 0 : i32
    return %arg0, %c0_i32, %c0_i32_0 : i32, i32, i32
  }
  func.func @transform_1(%arg0: i32) -> (i32, i32, i32) {
    %c0_i32 = arith.constant 0 : i32
    %c0_i32_0 = arith.constant 0 : i32
    %c0_i32_1 = arith.constant 0 : i32
    %c0_i32_2 = arith.constant 0 : i32
    return %c0_i32, %c0_i32_0, %c0_i32_1 : i32, i32, i32
  }
  func.func @transform_2(%arg0: i32) -> (i32, i32, i32) {
    %c0_i32 = arith.constant 0 : i32
    %c0_i32_0 = arith.constant 0 : i32
    %c0_i32_1 = arith.constant 0 : i32
    %c0_i32_2 = arith.constant 0 : i32
    return %c0_i32, %c0_i32_0, %c0_i32_1 : i32, i32, i32
  }
  func.func @transform_3(%arg0: i32) -> (i32, i32) {
    %c0_i32 = arith.constant 0 : i32
    %c0_i32_0 = arith.constant 0 : i32
    %c0_i32_1 = arith.constant 0 : i32
    return %c0_i32, %c0_i32_0 : i32, i32
  }
  func.func @transform_4(%arg0: i32) -> (i32, i32, i32) {
    %c0_i32 = arith.constant 0 : i32
    %c0_i32_0 = arith.constant 0 : i32
    %c0_i32_1 = arith.constant 0 : i32
    %c0_i32_2 = arith.constant 0 : i32
    return %c0_i32, %c0_i32_0, %c0_i32_1 : i32, i32, i32
  }
  func.func @transform_5(%arg0: i32) -> (i32, i32) {
    %c0_i32 = arith.constant 0 : i32
    %c0_i32_0 = arith.constant 0 : i32
    %c0_i32_1 = arith.constant 0 : i32
    return %c0_i32, %c0_i32_0 : i32, i32
  }
  func.func @transform_6(%arg0: i32) -> (i32, i32, i32) {
    %c0_i32 = arith.constant 0 : i32
    %c0_i32_0 = arith.constant 0 : i32
    %c0_i32_1 = arith.constant 0 : i32
    %c0_i32_2 = arith.constant 0 : i32
    return %c0_i32, %c0_i32_0, %c0_i32_1 : i32, i32, i32
  }
  func.func @transform_7(%arg0: i32) -> (i32, i32, i32) {
    %c0_i32 = arith.constant 0 : i32
    %c0_i32_0 = arith.constant 0 : i32
    %c0_i32_1 = arith.constant 0 : i32
    %c0_i32_2 = arith.constant 0 : i32
    return %c0_i32, %c0_i32_0, %c0_i32_1 : i32, i32, i32
  }
  func.func @transform_8(%arg0: i32) -> (i32, i32) {
    %c0_i32 = arith.constant 0 : i32
    %c0_i32_0 = arith.constant 0 : i32
    %c0_i32_1 = arith.constant 0 : i32
    return %c0_i32, %c0_i32_0 : i32, i32
  }
  func.func @transform_9(%arg0: i32) -> (i32, i32) {
    %c0_i32 = arith.constant 0 : i32
    %c0_i32_0 = arith.constant 0 : i32
    %c0_i32_1 = arith.constant 0 : i32
    return %c0_i32, %c0_i32_0 : i32, i32
  }
  func.func @transform_10(%arg0: i32) -> (i32, i32, i32) {
    %c0_i32 = arith.constant 0 : i32
    %c0_i32_0 = arith.constant 0 : i32
    %c0_i32_1 = arith.constant 0 : i32
    return %arg0, %c0_i32, %c0_i32_0 : i32, i32, i32
  }
}

</mosaic_0001>

<bundles_post_ra>
// kernel: tpu_custom_call.1
= control target key start
LH: loop header
LB: loop body
LE: loop exit
PB: predicated region body
PF: predicated region fallthrough
CT: control target
= control target key end

     0   :  { %s4064_s0 = inlined_call_operand.hbm [shape: f32[2,16,128], index: 0, kind: input, shape index: {}]   ;;  %s4065_s1 = inlined_call_operand.hbm [shape: f32[2,16,16], index: 1, kind: input, shape index: {}]   ;;  %s4066_s2 = inlined_call_operand.hbm [shape: f32[3,128,256], index: 2, kind: input, shape index: {}]   ;;  %s4067_s3 = inlined_call_operand.vmem [shape: f32[1,256], index: 3, kind: input, shape index: {}]   ;;  %s4068_s4 = inlined_call_operand.hbm [shape: f32[3,256,256], index: 4, kind: input, shape index: {}]   ;;  %s4069_s5 = inlined_call_operand.vmem [shape: f32[1,256], index: 5, kind: input, shape index: {}]   ;;  %s4070_s6 = inlined_call_operand.hbm [shape: f32[3,8,16], index: 6, kind: input, shape index: {}]   ;;  %s4071_s7 = inlined_call_operand.hbm [shape: f32[3,256,128], index: 7, kind: input, shape index: {}]   ;;  %s4072_s8 = inlined_call_operand.hbm [shape: f32[128,128], index: 8, kind: input, shape index: {}]   ;;  %s4073_s9 = inlined_call_operand.vmem [shape: f32[1,128], index: 9, kind: input, shape index: {}]   ;;  %s4074_s10 = inlined_call_operand.hbm [shape: f32[2,8,128], index: 10, kind: output, shape index: {}]  }
   0x1   :  { %4084 = sst [smem:[#allocation20_spill]] %s4065_s1 }
   0x2   :  { %4085 = sst [smem:[#allocation21_spill]] %s4073_s9 }
   0x3   :  { %4086 = sst [smem:[#allocation22_spill]] %s4074_s10 }
   0x4   :  { %15 = vsyncpa [#allocation3], 0 }
   0x5   :  { %17 = vsyncpa [#allocation3 + $0x1], 0 }
   0x6   :  { %18 = vsyncpa [#allocation6], 0 }
   0x7   :  { %19 = vsyncpa [#allocation9], 0 }
   0x8   :  { %20 = vsyncpa [#allocation12], 0 }
   0x9   :  { %21 = vsyncpa [#allocation4], 0 }
   0xa   :  { %23 = vsyncpa [#allocation4 + $0x1], 0  ;;  %s3584_s13 = smov 0   ;;  %s3586_s14 = smov 0  }
   0xb   :  { %s3588_s15 = smov 0   ;;  %s3590_s16 = smov 0  }
   0xc LB: > { %s3514_s17 = smov [#allocation5]   ;;  %s3605_s19 = sadd.s32 4294967295, %s3512_s16   ;;  %s3512_s16 = sphi %s3590_s16, %s4116_s16   ;;  %s3508_s15 = sphi %s3588_s15, %s4115_s15   ;;  %s3504_s14 = sphi %s3586_s14, %s4114_s14   ;;  %s3500_s13 = sphi %s3584_s13, %s4113_s13  }
   0xd   : > { %s287_s18 = sshll.u32 %s3514_s17, 4  ;;  %p2438_p0 = scmp.ge.s32.totalorder %s3512_s16, 1  ;;  %s3610_s18 = int_to_ptr.vmem [resolvable:$true] %s287_s18 }
   0xe   : > { %p4078_p1 = scmp.eq.s32.totalorder %s3605_s19, 0  ;;  %p275_p2 = scmp.lt.s32.totalorder %s3512_s16, 3 }
   0xf   : > { %s3515_s22 = smov [#allocation8]   ;;  %s3516_s24 = smov [#allocation11]  }
  0x10   : > { %p3612_p3 = pnand %p2438_p0, %p275_p2  ;;  %s316_s23 = sshll.u32 %s3515_s22, 4  ;;  %s3625_s23 = int_to_ptr.vmem [resolvable:$true] %s316_s23 }
  0x11   : > { %s3627_s25 = sshll.u32 %s3516_s24, 4  ;;  %s4089_s1 = sld [smem:[#allocation20_spill]]  ;;  %s346_s25 = int_to_ptr.vmem [resolvable:$true] %s3627_s25 }
  0x12   : > { %s4087_s20 = scalar_select %p3612_p3, 1, 0 }
  0x13   : > { %p3148_p5 = pneg %p3612_p3 }
  0x15   : > { %p3621_p6 = pnand %p3148_p5, %p4078_p1 }
  0x17   : > { %s3236_s28 = scalar_lea.hbm %s4089_s1, 512  ;;  %p3637_p8 = pneg %p3621_p6 }
  0x18   : > { %p3237_p7 = scmp.ne.s32.totalorder %s4089_s1, %s3236_s28  ;;  %p3243_p11 = scmp.lt.u32.totalorder %s3236_s28, %s4089_s1 }
  0x1a   : > { %p3239_p9 = pnand %p3637_p8, %p3237_p7 }
  0x1c   : > { %p3240_p10 = pneg %p3239_p9 }
  0x1e   : > { %p3245_p12 = pnand %p3243_p11, %p3240_p10 }
  0x20   : > { %3248 = shalt.err (!%p3245_p12)
}
  0x21   : > { %s3249_s22 = scalar_lea.vmem %s3610_s18, 512  ;;  %p3257_p5 = scmp.lt.s32.totalorder %s3610_s18, %s3610_s18 }
  0x22   : > { %p3250_p13 = scmp.ne.s32.totalorder %s3610_s18, %s3249_s22  ;;  %p3258_p4 = scmp.lt.s32.totalorder %s3249_s22, %s3249_s22 }
  0x24   : > { %p3252_p0 = pnand %p3250_p13, %p3637_p8  ;;  %p3259_p7 = por %p3258_p4, %p3257_p5 }
  0x26   : > { %p3253_p2 = pneg %p3252_p0 }
  0x28   : > { %p3260_p9 = pnand %p3259_p7, %p3253_p2 }
  0x2a   : > { %3263 = shalt.err (!%p3260_p9)
}
  0x2b   : > { %s4076_s24 = smov 128   ;;  %s4082_s26 = smov 8  }
  0x2c   : > { %3151 = dma.hbm_to_vmem [thread:$0]  (!%p3621_p6), %s4089_s1, 512, %s3610_s18, [#allocation6], %s4076_s24, %s4076_s24, %s4082_s26  }
  0x2d   : > { %s3264_s12 = scalar_lea.hbm %s4068_s4, 24576 }
  0x2e   : > { %p3265_p4 = scmp.ne.s32.totalorder %s4068_s4, %s3264_s12  ;;  %p3271_p12 = scmp.lt.u32.totalorder %s3264_s12, %s4068_s4 }
  0x30   : > { %p3267_p10 = pnand %p3265_p4, %p3637_p8 }
  0x32   : > { %p3268_p11 = pneg %p3267_p10 }
  0x34   : > { %p3273_p13 = pnand %p3271_p12, %p3268_p11 }
  0x36   : > { %3276 = shalt.err (!%p3273_p13)
}
  0x37   : > { %s3277_s18 = scalar_lea.vmem %s3625_s23, 24576  ;;  %p3285_p7 = scmp.lt.s32.totalorder %s3625_s23, %s3625_s23 }
  0x38   : > { %p3278_p0 = scmp.ne.s32.totalorder %s3625_s23, %s3277_s18  ;;  %p3286_p9 = scmp.lt.s32.totalorder %s3277_s18, %s3277_s18 }
  0x3a   : > { %p3280_p2 = pnand %p3278_p0, %p3637_p8  ;;  %p3287_p4 = por %p3286_p9, %p3285_p7 }
  0x3c   : > { %p3281_p5 = pneg %p3280_p2 }
  0x3e   : > { %p3288_p10 = pnand %p3287_p4, %p3281_p5 }
  0x40   : > { %3291 = shalt.err (!%p3288_p10)
}
  0x41   : > { %s4080_s27 = smov 256   ;;  %s4081_s9 = smov 16  }
  0x42   : > { %3157 = dma.hbm_to_vmem [thread:$0]  (!%p3621_p6), %s4068_s4, 24576, %s3625_s23, [#allocation9], %s4080_s27, %s4080_s27, %s4081_s9  }
  0x43   : > { %s3292_s12 = scalar_lea.hbm %s4071_s7, 12288 }
  0x44   : > { %p3293_p11 = scmp.ne.s32.totalorder %s4071_s7, %s3292_s12  ;;  %p3299_p0 = scmp.lt.u32.totalorder %s3292_s12, %s4071_s7 }
  0x46   : > { %p3295_p12 = pnand %p3293_p11, %p3637_p8 }
  0x48   : > { %p3296_p13 = pneg %p3295_p12 }
  0x4a   : > { %p3301_p2 = pnand %p3299_p0, %p3296_p13 }
  0x4c   : > { %3304 = shalt.err (!%p3301_p2)
}
  0x4d   : > { %s3305_s10 = scalar_lea.vmem %s346_s25, 12288  ;;  %p3313_p4 = scmp.lt.s32.totalorder %s346_s25, %s346_s25 }
  0x4e   : > { %p3306_p5 = scmp.ne.s32.totalorder %s346_s25, %s3305_s10  ;;  %p3314_p10 = scmp.lt.s32.totalorder %s3305_s10, %s3305_s10 }
  0x50   : > { %p3308_p7 = pnand %p3306_p5, %p3637_p8  ;;  %p3315_p1 = por %p3314_p10, %p3313_p4 }
  0x52   : > { %p3309_p9 = pneg %p3308_p7 }
  0x54   : > { %p3316_p3 = pnand %p3315_p1, %p3309_p9 }
  0x56   : > { %3319 = shalt.err (!%p3316_p3)
}
  0x57   : > { %s4091_s23 = smov 128   ;;  %s3521_s29 = smov [#allocation7]  }
  0x58   : > { %3163 = dma.hbm_to_vmem [thread:$0]  (!%p3621_p6), %s4071_s7, 12288, %s346_s25, [#allocation12], %s4091_s23, %s4091_s23, %s4082_s26  }
  0x59   : > { %s300_s30 = sshll.u32 %s3521_s29, 4  ;;  %s3522_s12 = smov [#allocation10]   ;;  %s301_s30 = int_to_ptr.vmem [resolvable:$true] %s300_s30 }
  0x5a   : > { %s332_s17 = sshll.u32 %s3522_s12, 4  ;;  %s3320_s10 = scalar_lea.hbm %s4066_s2, 12288  ;;  %s333_s17 = int_to_ptr.vmem [resolvable:$true] %s332_s17 }
  0x5b   : > { %p3321_p1 = scmp.ne.s32.totalorder %s4066_s2, %s3320_s10  ;;  %p3327_p12 = scmp.lt.u32.totalorder %s3320_s10, %s4066_s2 }
  0x5d   : > { %p3323_p3 = pnand %p3321_p1, %p3637_p8 }
  0x5f   : > { %p3324_p11 = pneg %p3323_p3 }
  0x61   : > { %p3329_p13 = pnand %p3327_p12, %p3324_p11 }
  0x63   : > { %3332 = shalt.err (!%p3329_p13)
}
  0x64   : > { %s3333_s25 = scalar_lea.vmem %s301_s30, 12288  ;;  %p3341_p7 = scmp.lt.s32.totalorder %s301_s30, %s301_s30 }
  0x65   : > { %p3334_p0 = scmp.ne.s32.totalorder %s301_s30, %s3333_s25  ;;  %p3342_p9 = scmp.lt.s32.totalorder %s3333_s25, %s3333_s25 }
  0x67   : > { %p3336_p2 = pnand %p3334_p0, %p3637_p8  ;;  %p3343_p4 = por %p3342_p9, %p3341_p7 }
  0x69   : > { %p3337_p5 = pneg %p3336_p2 }
  0x6b   : > { %p3344_p10 = pnand %p3343_p4, %p3337_p5 }
  0x6d   : > { %3347 = shalt.err (!%p3344_p10)
}
  0x6e   : > { %s4092_s27 = smov 16   ;;  %s4093_s9 = smov 256  }
  0x6f   : > { %3154 = dma.hbm_to_vmem [thread:$0]  (!%p3621_p6), %s4066_s2, 12288, %s301_s30, [#allocation6], %s4093_s9, %s4093_s9, %s4092_s27  }
  0x70   : > { %s3348_s22 = scalar_lea.hbm %s4070_s6, 384 }
  0x71   : > { %p3349_p1 = scmp.ne.s32.totalorder %s4070_s6, %s3348_s22  ;;  %p3355_p12 = scmp.lt.u32.totalorder %s3348_s22, %s4070_s6 }
  0x73   : > { %p3351_p3 = pnand %p3349_p1, %p3637_p8 }
  0x75   : > { %p3352_p11 = pneg %p3351_p3 }
  0x77   : > { %p3357_p13 = pnand %p3355_p12, %p3352_p11 }
  0x79   : > { %3360 = shalt.err (!%p3357_p13)
}
  0x7a   : > { %s3361_s1 = scalar_lea.vmem %s333_s17, 384  ;;  %p3369_p7 = scmp.lt.s32.totalorder %s333_s17, %s333_s17 }
  0x7b   : > { %p3362_p0 = scmp.ne.s32.totalorder %s333_s17, %s3361_s1  ;;  %p3370_p9 = scmp.lt.s32.totalorder %s3361_s1, %s3361_s1 }
  0x7d   : > { %p3364_p2 = pnand %p3362_p0, %p3637_p8  ;;  %p3371_p4 = por %p3370_p9, %p3369_p7 }
  0x7f   : > { %p3365_p5 = pneg %p3364_p2 }
  0x81   : > { %p3372_p10 = pnand %p3371_p4, %p3365_p5 }
  0x83   : > { %3375 = shalt.err (!%p3372_p10)
}
  0x84   : > { %3160 = dma.hbm_to_vmem [thread:$0]  (!%p3621_p6), %s4070_s6, 384, %s333_s17, [#allocation9], %s4091_s23, %s4091_s23, %s4082_s26  }
  0x85   : > { %s3523_s9 = smov [#allocation13]   ;;  %s3376_s22 = scalar_lea.hbm %s4072_s8, 2048 }
  0x86   : > { %s358_s28 = sshll.u32 %s3523_s9, 4  ;;  %p3377_p1 = scmp.ne.s32.totalorder %s4072_s8, %s3376_s22  ;;  %s359_s28 = int_to_ptr.vmem [resolvable:$true] %s358_s28 }
  0x87   : > { %p3383_p12 = scmp.lt.u32.totalorder %s3376_s22, %s4072_s8 }
  0x88   : > { %p3379_p3 = pnand %p3377_p1, %p3637_p8 }
  0x8a   : > { %p3380_p11 = pneg %p3379_p3 }
  0x8c   : > { %p3385_p13 = pnand %p3383_p12, %p3380_p11 }
  0x8e   : > { %3388 = shalt.err (!%p3385_p13)
}
  0x8f   : > { %s3389_s17 = scalar_lea.vmem %s359_s28, 2048  ;;  %p3397_p7 = scmp.lt.s32.totalorder %s359_s28, %s359_s28 }
  0x90   : > { %p3390_p0 = scmp.ne.s32.totalorder %s359_s28, %s3389_s17  ;;  %p3398_p9 = scmp.lt.s32.totalorder %s3389_s17, %s3389_s17 }
  0x92   : > { %p3392_p2 = pnand %p3390_p0, %p3637_p8  ;;  %p3399_p4 = por %p3398_p9, %p3397_p7 }
  0x94   : > { %p3393_p5 = pneg %p3392_p2 }
  0x96   : > { %p3400_p10 = pnand %p3399_p4, %p3393_p5 }
  0x98   : > { %3403 = shalt.err (!%p3400_p10)
}
  0x99   : > { %3166 = dma.hbm_to_vmem [thread:$0]  (!%p3621_p6), %s4072_s8, 2048, %s359_s28, [#allocation12], %s4091_s23, %s4091_s23, %s4082_s26  }
  0x9a   : > { %s2437_s21 = sadd.s32 4294967294, %s3512_s16   ;;  %s3774_s11 = sadd.s32 1, %s3512_s16  }
  0x9b   : > { %s33_s27 = ssub.s32 %s3512_s16, %s3774_s11  ;;  %s36_s9 = sadd.s32 1, %s3508_s15 }
  0x9c   : > { %p34_p8 = scmp.eq.s32.totalorder %s33_s27, 0  ;;  %p43_p1 = scmp.ne.s32.totalorder %s3508_s15, %s3504_s14 }
  0x9d   : > { %p44_p3 = scmp.eq.s32.totalorder %s3512_s16, 0  ;;  %p49_p11 = scmp.ne.s32.totalorder %s3504_s14, %s3500_s13 }
  0x9e   : > { %s3785_s29 = scalar_select %p34_p8, %s3508_s15, %s36_s9  }
  0x9f   : > { %p3787_p12 = por %p44_p3, %p43_p1  ;;  %p4095_p13 = scmp.eq.s32.totalorder %s3605_s19, 0 }
  0xa0   : > { %p262_p0 = scmp.eq.s32.totalorder %s3605_s19, 1  ;;  %p268_p2 = scmp.eq.s32.totalorder %s2437_s21, 1 }
  0xa1   : > { %p3793_p6 = por %p4095_p13, %p49_p11  ;;  %p3181_p5 = scmp.lt.s32.totalorder %s3512_s16, 2 }
  0xa2   : > { %s375_s22 = sand.u32 1, %s3508_s15   ;;  %p3800_p7 = por %p262_p0, %p43_p1 }
  0xa3   : > { %p3804_p9 = por %p268_p2, %p49_p11  ;;  %s2446_s24 = sshll.u32 %s375_s22, 4 }
  0xa4   : > { %s4097_s18 = scalar_select %p3800_p7, 1, 0 }
  0xa5   : > { %s4098_s10 = scalar_select %p3804_p9, 1, 0 }
  0xa6   : > { %s2475_s25 = sshll.u32 %s3512_s16, 8  ;;  %s379_s21 = scalar_lea.vmem [#allocation2], %s2446_s24 }
  0xa7   : > { %s3812_s30 = scalar_lea.hbm %s4064_s0, %s2475_s25  ;;  %s386_s27 = sshll.u32 %s379_s21, 4  ;;  %s3814_s27 = int_to_ptr.vmem [resolvable:$true] %s386_s27 }
  0xa8   : > { %p3818_p4 = pnand %p3181_p5, %p3787_p12  ;;  %s3822_s26 = scalar_lea.sflag [#allocation3], %s375_s22 }
  0xa9   : > { %s3404_s17 = scalar_lea.hbm %s3812_s30, 256  ;;  %s3409_s12 = scalar_lea.hbm %s4064_s0, 512 }
  0xaa   : > { %p3405_p10 = scmp.ne.s32.totalorder %s3812_s30, %s3404_s17  ;;  %p3406_p8 = pneg %p3818_p4 }
  0xab   : > { %p3410_p11 = scmp.lt.u32.totalorder %s3812_s30, %s4064_s0  ;;  %p3411_p12 = scmp.lt.u32.totalorder %s3409_s12, %s3404_s17 }
  0xac   : > { %p3407_p1 = pnand %p3406_p8, %p3405_p10  ;;  %p3413_p0 = scmp.lt.u32.totalorder %s3404_s17, %s3812_s30 }
  0xad   : > { %p3412_p13 = por %p3411_p12, %p3410_p11 }
  0xae   : > { %p3408_p3 = pneg %p3407_p1 }
  0xaf   : > { %p3414_p2 = por %p3413_p0, %p3412_p13 }
  0xb1   : > { %p3415_p5 = pnand %p3414_p2, %p3408_p3 }
  0xb3   : > { %3418 = shalt.err (!%p3415_p5)
}
  0xb4   : > { %s3419_s22 = scalar_lea.vmem %s3814_s27, 256  ;;  %s3524_s24 = smov [#allocation2]  }
  0xb5   : > { %p3420_p10 = scmp.ne.s32.totalorder %s3814_s27, %s3419_s22  ;;  %s3424_s25 = sshll.u32 %s3524_s24, 4  ;;  %s3425_s25 = int_to_ptr.vmem [resolvable:$false] %s3424_s25 }
  0xb6   : > { %s3426_s1 = scalar_lea.vmem %s3425_s25, 512  ;;  %p3427_p7 = scmp.lt.s32.totalorder %s3814_s27, %s3425_s25 }
  0xb7   : > { %p3422_p1 = pnand %p3420_p10, %p3406_p8  ;;  %p3428_p11 = scmp.lt.s32.totalorder %s3426_s1, %s3419_s22 }
  0xb9   : > { %p3423_p9 = pneg %p3422_p1  ;;  %p3429_p12 = por %p3428_p11, %p3427_p7 }
  0xbb   : > { %p3430_p13 = pnand %p3429_p12, %p3423_p9 }
  0xbd   : > { %3433 = shalt.err (!%p3430_p13)
}
  0xbe   : > { %s4100_s17 = smov 8   ;;  %p4101_p8 = scmp.ne.s32.totalorder %s4087_s20, 0 }
  0xbf   : > { %3170 = dma.hbm_to_vmem [thread:$0]  (!%p3818_p4), %s3812_s30, 256, %s3814_s27, %s3822_s26, %s4091_s23, %s4091_s23, %s4100_s17  }
  0xc0   : > { %398 = sbr.rel (%p4101_p8) target bundleno = 1928 (0x788), region = 60  ;;  %s3856_s12 = sand.u32 (!%p4101_p8), 1, %s3504_s14  }
  0xc1   : > { %s2450_s21 = sshll.u32 (!%p4101_p8), %s3856_s12, 4  ;;  %s401_s22 = scalar_lea.sflag (!%p4101_p8), [#allocation3], %s3856_s12 }
  0xc2   : > { %s3860_s24 = scalar_lea.vmem (!%p4101_p8), [#allocation2], %s2450_s21 }
  0xc7   : > { %3479 = dma.done.wait (%p3793_p6), %s401_s22, 256  }
  0xc8   : > { %3481 = vsyncadd (%p3793_p6), %s401_s22, 4294967040  ;;  %p4102_p7 = scmp.eq.s32.totalorder %s3605_s19, 0 }
  0xca   : > { %3483 = dma.done.wait (%p4102_p7), [#allocation6], 12800   ;;  %p4103_p9 = pmov %p4102_p7 }
  0xcb   : > { %p4104_p4 = pmov %p4102_p7 }
  0xcc   : > { %3485 = vsyncadd (%p4103_p9), [#allocation6], 4294954496 }
  0xcd   : > { %3487 = dma.done.wait (%p4104_p4), [#allocation9], 24960   ;;  %p4105_p3 = pmov %p4104_p4 }
  0xcf   : > { %3489 = vsyncadd (%p4105_p3), [#allocation9], 4294942336  ;;  %p4106_p0 = pmov %p4105_p3 }
  0xd1   : > { %3491 = dma.done.wait (%p4106_p0), [#allocation12], 14336   ;;  %p4107_p2 = pmov %p4106_p0 }
  0xd2   : > { %v3525_v0 = vmov 0.0   ;;  %vm471_vm0 = vcmask 130048   ;;  %v3880_v1 = vld [vmem:[%s3860_s24] sm:$0xff]  ;;  %v3883_v2 = vld [vmem:[%s3860_s24 + $0x8] sm:$0xff]  ;;  %vm3527_vm1 = vmmov 0   ;;  %s2457_s30 = sshll.u32 %s3856_s12, 3 }
  0xd3   : > { %3493 = vsyncadd (%p4107_p2), [#allocation12], 4294952960  ;;  %1131 = vmatprep.mubr.f32.mxu1 %v3525_v0  ;;  %v3885_v3 = vld [vmem:[#allocation5] sm:$0xff]  ;;  %v467_v4 = vmax.f32 %v3880_v1, 0.0  ;;  %v468_v5 = vmax.f32 %v3883_v2, 0.0  ;;  %v671_v7 = vld [vmem:[#allocation7 + $0x108] sm:$0xff] }
  0xd4   : > { %2613 = vmatprep.mubr.msk.f32.mxu0 %vm471_vm0, %v3885_v3  ;;  %v673_v8 = vld [vmem:[#allocation7 + $0x118] sm:$0xff]  ;;  %v3895_v9 = vld [vmem:[#allocation5 + $0x8] sm:$0xff]  ;;  %v3897_v10 = vld [vmem:[#allocation5 + $0x10] sm:$0xff]  ;;  %s4108_s25 = sld [smem:[#allocation21_spill]]  ;;  %s2472_s1 = sshll.u32 %s3605_s19, 7 }
  0xd5   : > { %v2665_v6 = vpack.c.bf16 %v468_v5, %v467_v4  ;;  %v2673_v11 = vpack.c.bf16 %v673_v8, %v671_v7  ;;  %v670_v12 = vld [vmem:[#allocation7 + $0x100] sm:$0xff]  ;;  %v672_v13 = vld [vmem:[#allocation7 + $0x110] sm:$0xff]  ;;  %v675_v14 = vld [vmem:[#allocation7 + $0x128] sm:$0xff]  ;;  %s464_s17 = scalar_lea.vmem [#allocation14], %s2457_s30  ;;  %s4109_s20 = sld [smem:[#allocation22_spill]] }
  0xd6   : > { %v677_v15 = vld [vmem:[#allocation7 + $0x138] sm:$0xff]  ;;  %v2675_v17 = vpack.c.bf16 %v672_v13, %v670_v12  ;;  %v674_v19 = vld [vmem:[#allocation7 + $0x120] sm:$0xff]  ;;  %v676_v20 = vld [vmem:[#allocation7 + $0x130] sm:$0xff]  ;;  %s2310_s21 = sshll.u32 %s464_s17, 4  ;;  %s2297_s23 = scalar_lea.sflag [#allocation4], %s3856_s12  ;;  %s4022_s21 = int_to_ptr.vmem [resolvable:$true] %s2310_s21 }
  0xd7   : > { %2666 = vmatprep.subr.bf16.mxu0 %v2665_v6  ;;  %v3903_v16 = vld [vmem:[#allocation5 + $0x18] sm:$0xff]  ;;  %v2677_v18 = vpack.c.bf16 %v677_v15, %v675_v14  ;;  %v679_v21 = vld [vmem:[#allocation7 + $0x148] sm:$0xff]  ;;  %v2679_v23 = vpack.c.bf16 %v676_v20, %v674_v19  ;;  %v678_v25 = vld [vmem:[#allocation7 + $0x140] sm:$0xff]  ;;  %s3434_s28 = scalar_lea.vmem %s4022_s21, 128  ;;  %p4110_p5 = scmp.ne.s32.totalorder %s4097_s18, 0 }
  0xd8   : > { %2668 = vmatpush3.bf16.msra.mxu0 %v2665_v6  ;;  %v681_v22 = vld [vmem:[#allocation7 + $0x158] sm:$0xff]  ;;  %v680_v26 = vld [vmem:[#allocation7 + $0x150] sm:$0xff]  ;;  %v683_v27 = vld [vmem:[#allocation7 + $0x168] sm:$0xff]  ;;  %p3435_p6 = scmp.ne.s32.totalorder %s4022_s21, %s3434_s28  ;;  %s3528_s19 = smov [#allocation14]  }
  0xd9   : > { %2670 = vmatprep.subr.bf16.mxu0 %v2665_v6  ;;  %v2681_v24 = vpack.c.bf16 %v681_v22, %v679_v21  ;;  %v685_v28 = vld [vmem:[#allocation7 + $0x178] sm:$0xff]  ;;  %v2683_v29 = vpack.c.bf16 %v680_v26, %v678_v25  ;;  %v682_v31 = vld [vmem:[#allocation7 + $0x160] sm:$0xff]  ;;  %v684_v32 = vld [vmem:[#allocation7 + $0x170] sm:$0xff]  ;;  %s3438_s30 = sshll.u32 %s3528_s19, 4  ;;  %s3439_s30 = int_to_ptr.vmem [resolvable:$false] %s3438_s30 }
  0xda   : > { %v2685_v30 = vpack.c.bf16 %v685_v28, %v683_v27  ;;  %v687_v33 = vld [vmem:[#allocation7 + $0x188] sm:$0xff]  ;;  %v689_v34 = vld [vmem:[#allocation7 + $0x198] sm:$0xff]  ;;  %v2687_v35 = vpack.c.bf16 %v684_v32, %v682_v31  ;;  %v686_v37 = vld [vmem:[#allocation7 + $0x180] sm:$0xff]  ;;  %p3436_p10 = pnand %p3435_p6, %p4110_p5  ;;  %s3440_s27 = scalar_lea.vmem %s3439_s30, 256 }
  0xdb   : > { %2614 = vmatmul.mubr.msk.f32.vlgmr.msra.gmra.mrb[0].mxu0 %vm471_vm0, %v3895_v9  ;;  %v2689_v36 = vpack.c.bf16 %v689_v34, %v687_v33  ;;  %v688_v38 = vld [vmem:[#allocation7 + $0x190] sm:$0xff]  ;;  %v691_v39 = vld [vmem:[#allocation7 + $0x1a8] sm:$0xff]  ;;  %v693_v40 = vld [vmem:[#allocation7 + $0x1b8] sm:$0xff]  ;;  %s4020_s26 = scalar_lea.hbm %s4109_s20, %s2472_s1  ;;  %p3441_p11 = scmp.lt.s32.totalorder %s4022_s21, %s3439_s30 }
  0xdc   : > { %2672 = vmatpush3.bf16.msra.mxu0 %v2665_v6  ;;  %2620 = vmatprep.mubr.msk.f32.mxu0 %vm471_vm0, %v3897_v10  ;;  %v2691_v41 = vpack.c.bf16 %v688_v38, %v686_v37  ;;  %v2693_v42 = vpack.c.bf16 %v693_v40, %v691_v39  ;;  %v690_v43 = vld [vmem:[#allocation7 + $0x1a0] sm:$0xff]  ;;  %v692_v44 = vld [vmem:[#allocation7 + $0x1b0] sm:$0xff]  ;;  %v695_v45 = vld [vmem:[#allocation7 + $0x1c8] sm:$0xff]  ;;  %p3437_p1 = pneg %p3436_p10  ;;  %p3442_p12 = scmp.lt.s32.totalorder %s3440_s27, %s3434_s28 }
  0xdd   : > { %2674 = vmatprep.subr.bf16.mxu0 %v2673_v11  ;;  %v697_v46 = vld [vmem:[#allocation7 + $0x1d8] sm:$0xff]  ;;  %v2695_v47 = vpack.c.bf16 %v692_v44, %v690_v43  ;;  %v694_v49 = vld [vmem:[#allocation7 + $0x1c0] sm:$0xff]  ;;  %v696_v50 = vld [vmem:[#allocation7 + $0x1d0] sm:$0xff] }
  0xde   : > { %v2697_v48 = vpack.c.bf16 %v697_v46, %v695_v45  ;;  %v699_v51 = vld [vmem:[#allocation7 + $0x1e8] sm:$0xff]  ;;  %v701_v52 = vld [vmem:[#allocation7 + $0x1f8] sm:$0xff]  ;;  %v2699_v53 = vpack.c.bf16 %v696_v50, %v694_v49  ;;  %v698_v55 = vld [vmem:[#allocation7 + $0x1e0] sm:$0xff]  ;;  %p3443_p13 = por %p3442_p12, %p3441_p11 }
  0xdf   : > { %2621 = vmatmul.mubr.msk.f32.vlgmr.msra.gmra.mrb[2].mxu0 %vm471_vm0, %v3903_v16  ;;  %v2701_v54 = vpack.c.bf16 %v701_v52, %v699_v51  ;;  %v700_v56 = vld [vmem:[#allocation7 + $0x1f0] sm:$0xff]  ;;  %v638_v57 = vld [vmem:[#allocation7 + $0x8] sm:$0xff]  ;;  %v640_v58 = vld [vmem:[#allocation7 + $0x18] sm:$0xff] }
  0xe0   : > { %2676 = vmatpush1.bf16.msra.mxu0 %v2675_v17  ;;  %766 = vmatprep.mubr.f32.mxu0 %v3525_v0  ;;  %v2703_v59 = vpack.c.bf16 %v700_v56, %v698_v55  ;;  %v2705_v60 = vpack.c.bf16 %v640_v58, %v638_v57  ;;  %v637_v61 = vld [vmem:[#allocation7] sm:$0xff]  ;;  %v639_v62 = vld [vmem:[#allocation7 + $0x10] sm:$0xff]  ;;  %v642_v63 = vld [vmem:[#allocation7 + $0x28] sm:$0xff]  ;;  %p3444_p8 = pnand %p3443_p13, %p3437_p1 }
  0xe1   : > { %2678 = vmatprep.subr.bf16.mxu0 %v2677_v18  ;;  %v644_v6 = vld [vmem:[#allocation7 + $0x38] sm:$0xff]  ;;  %v2707_v7 = vpack.c.bf16 %v639_v62, %v637_v61  ;;  %v641_v11 = vld [vmem:[#allocation7 + $0x20] sm:$0xff]  ;;  %v643_v12 = vld [vmem:[#allocation7 + $0x30] sm:$0xff] }
  0xe2   : > { %v2709_v8 = vpack.c.bf16 %v644_v6, %v642_v63  ;;  %v646_v13 = vld [vmem:[#allocation7 + $0x48] sm:$0xff]  ;;  %v648_v14 = vld [vmem:[#allocation7 + $0x58] sm:$0xff]  ;;  %v2711_v15 = vpack.c.bf16 %v643_v12, %v641_v11  ;;  %v645_v18 = vld [vmem:[#allocation7 + $0x40] sm:$0xff] }
  0xe3   : > { %v2713_v17 = vpack.c.bf16 %v648_v14, %v646_v13  ;;  %v647_v19 = vld [vmem:[#allocation7 + $0x50] sm:$0xff]  ;;  %v650_v20 = vld [vmem:[#allocation7 + $0x68] sm:$0xff]  ;;  %v652_v21 = vld [vmem:[#allocation7 + $0x78] sm:$0xff] }
  0xe4   : > { %2680 = vmatpush1.bf16.msra.mxu0 %v2679_v23  ;;  %v2715_v22 = vpack.c.bf16 %v647_v19, %v645_v18  ;;  %v2717_v1 = vpack.c.bf16 %v652_v21, %v650_v20  ;;  %v651_v23 = vld [vmem:[#allocation7 + $0x70] sm:$0xff]  ;;  %v656_v25 = vld [vmem:[#allocation7 + $0x98] sm:$0xff]  ;;  %v653_v28 = vld [vmem:[#allocation7 + $0x80] sm:$0xff] }
  0xe5   : > { %2682 = vmatprep.subr.bf16.mxu0 %v2681_v24  ;;  %v654_v24 = vld [vmem:[#allocation7 + $0x88] sm:$0xff]  ;;  %v660_v31 = vld [vmem:[#allocation7 + $0xb8] sm:$0xff]  ;;  %v657_v32 = vld [vmem:[#allocation7 + $0xa0] sm:$0xff] }
  0xe6   : > { %v2721_v27 = vpack.c.bf16 %v656_v25, %v654_v24  ;;  %v659_v33 = vld [vmem:[#allocation7 + $0xb0] sm:$0xff]  ;;  %v662_v34 = vld [vmem:[#allocation7 + $0xc8] sm:$0xff]  ;;  %v661_v38 = vld [vmem:[#allocation7 + $0xc0] sm:$0xff] }
  0xe7   : > { %v663_v39 = vld [vmem:[#allocation7 + $0xd0] sm:$0xff]  ;;  %v666_v40 = vld [vmem:[#allocation7 + $0xe8] sm:$0xff]  ;;  %v665_v44 = vld [vmem:[#allocation7 + $0xe0] sm:$0xff] }
  0xe8   : > { %2684 = vmatpush1.bf16.msra.mxu0 %v2683_v29  ;;  %v655_v29 = vld [vmem:[#allocation7 + $0x90] sm:$0xff]  ;;  %v857_v50 = vld [vmem:[#allocation7 + $0x200] sm:$0xff]  ;;  %v862_v52 = vld [vmem:[#allocation7 + $0x228] sm:$0xff] }
  0xe9   : > { %2686 = vmatprep.subr.bf16.mxu0 %v2685_v30  ;;  %v658_v30 = vld [vmem:[#allocation7 + $0xa8] sm:$0xff]  ;;  %v2723_v2 = vpack.c.bf16 %v655_v29, %v653_v28  ;;  %v667_v45 = vld [vmem:[#allocation7 + $0xf0] sm:$0xff]  ;;  %v861_v57 = vld [vmem:[#allocation7 + $0x220] sm:$0xff] }
  0xea   : > { %v2735_v46 = vpack.c.bf16 %v667_v45, %v665_v44  ;;  %v859_v51 = vld [vmem:[#allocation7 + $0x210] sm:$0xff]  ;;  %v868_v61 = vld [vmem:[#allocation7 + $0x258] sm:$0xff]  ;;  %v865_v6 = vld [vmem:[#allocation7 + $0x240] sm:$0xff] }
  0xeb   : > { %v863_v58 = vld [vmem:[#allocation7 + $0x230] sm:$0xff]  ;;  %v870_v11 = vld [vmem:[#allocation7 + $0x268] sm:$0xff]  ;;  %v872_v12 = vld [vmem:[#allocation7 + $0x278] sm:$0xff] }
  0xec   : > { %2688 = vmatpush1.bf16.msra.mxu0 %v2687_v35  ;;  %v664_v35 = vld [vmem:[#allocation7 + $0xd8] sm:$0xff]  ;;  %v2743_v62 = vpack.c.bf16 %v863_v58, %v861_v57  ;;  %v871_v18 = vld [vmem:[#allocation7 + $0x270] sm:$0xff]  ;;  %v874_v19 = vld [vmem:[#allocation7 + $0x288] sm:$0xff] }
  0xed   : > { %2690 = vmatprep.subr.bf16.mxu0 %v2689_v36  ;;  %v2727_v36 = vpack.c.bf16 %v659_v33, %v657_v32  ;;  %v2729_v37 = vpack.c.bf16 %v664_v35, %v662_v34  ;;  %v876_v20 = vld [vmem:[#allocation7 + $0x298] sm:$0xff]  ;;  %v879_v28 = vld [vmem:[#allocation7 + $0x2b0] sm:$0xff]  ;;  %v882_v29 = vld [vmem:[#allocation7 + $0x2c8] sm:$0xff] }
  0xee   : > { %v880_v24 = vld [vmem:[#allocation7 + $0x2b8] sm:$0xff]  ;;  %v883_v32 = vld [vmem:[#allocation7 + $0x2d0] sm:$0xff]  ;;  %v886_v33 = vld [vmem:[#allocation7 + $0x2e8] sm:$0xff] }
  0xef   : > { %v888_v34 = vld [vmem:[#allocation7 + $0x2f8] sm:$0xff] }
  0xf0   : > { %2692 = vmatpush1.bf16.msra.mxu0 %v2691_v41  ;;  %v668_v41 = vld [vmem:[#allocation7 + $0xf8] sm:$0xff] }
  0xf1   : > { %2694 = vmatprep.subr.bf16.mxu0 %v2693_v42  ;;  %v2731_v42 = vpack.c.bf16 %v663_v39, %v661_v38  ;;  %v2733_v43 = vpack.c.bf16 %v668_v41, %v666_v40  ;;  %v887_v38 = vld [vmem:[#allocation7 + $0x2f0] sm:$0xff]  ;;  %v972_v40 = vlaneseq  ;;  %v1212_v57 = vld [vmem:[#allocation8 + $0x218] sm:$0xff] }
  0xf3   : > { %v3918_v41 = vshrl.u32 %v972_v40, 7  ;;  %v1240_v40 = vld [vmem:[#allocation8 + $0x2f8] sm:$0xff] }
  0xf4   : > { %2696 = vmatpush1.bf16.msra.mxu0 %v2695_v47  ;;  %v858_v47 = vld [vmem:[#allocation7 + $0x208] sm:$0xff] }
  0xf5   : > { %2698 = vmatprep.subr.bf16.mxu0 %v2697_v48  ;;  %v860_v48 = vld [vmem:[#allocation7 + $0x218] sm:$0xff]  ;;  %v974_v44 = vsub.s32 0, %v3918_v41 }
  0xf6   : > { %v2737_v49 = vpack.c.bf16 %v860_v48, %v858_v47 }
  0xf8   : > { %2700 = vmatpush1.bf16.msra.mxu0 %v2699_v53  ;;  %v864_v53 = vld [vmem:[#allocation7 + $0x238] sm:$0xff] }
  0xf9   : > { %2702 = vmatprep.subr.bf16.mxu0 %v2701_v54  ;;  %v2739_v54 = vpack.c.bf16 %v859_v51, %v857_v50  ;;  %v2741_v56 = vpack.c.bf16 %v864_v53, %v862_v52 }
  0xfc   : > { %2704 = vmatpush1.bf16.msra.mxu0 %v2703_v59 }
  0xfd   : > { %2706 = vmatprep.subr.bf16.mxu0 %v2705_v60  ;;  %v866_v60 = vld [vmem:[#allocation7 + $0x248] sm:$0xff] }
  0xfe   : > { %v2745_v63 = vpack.c.bf16 %v868_v61, %v866_v60 }
  0xff   : > { %767 = vmatmul.mubr.f32.vlgmr.msra.gmra.mrb[4].mxu0 %v467_v4  ;;  %v649_v4 = vld [vmem:[#allocation7 + $0x60] sm:$0xff] }
 0x100   : > { %2708 = vmatpush1.bf16.msra.mxu0 %v2707_v7  ;;  %772 = vmatprep.mubr.f32.mxu0 %v3525_v0  ;;  %v2719_v26 = vpack.c.bf16 %v651_v23, %v649_v4  ;;  %v867_v7 = vld [vmem:[#allocation7 + $0x250] sm:$0xff]  ;;  %v878_v23 = vld [vmem:[#allocation7 + $0x2a8] sm:$0xff] }
 0x101   : > { %2710 = vmatprep.subr.bf16.mxu0 %v2709_v8  ;;  %v2747_v14 = vpack.c.bf16 %v867_v7, %v865_v6  ;;  %v875_v4 = vld [vmem:[#allocation7 + $0x290] sm:$0xff] }
 0x102   : > { %v1211_v6 = vld [vmem:[#allocation8 + $0x210] sm:$0xff] }
 0x103   : > { %773 = vmatmul.mubr.f32.gmra.mrb[6].mxu0 %v468_v5  ;;  %v2725_v5 = vpack.c.bf16 %v660_v31, %v658_v30  ;;  %v884_v30 = vld [vmem:[#allocation7 + $0x2d8] sm:$0xff] }
 0x104   : > { %2712 = vmatpush1.bf16.msra.mxu0 %v2711_v15  ;;  %843 = vmatprep.mubr.f32.mxu0 %v3525_v0  ;;  %v2749_v15 = vpack.c.bf16 %v872_v12, %v870_v11  ;;  %v1216_v11 = vld [vmem:[#allocation8 + $0x238] sm:$0xff] }
 0x105   : > { %2714 = vmatprep.subr.bf16.mxu0 %v2713_v17  ;;  %v869_v17 = vld [vmem:[#allocation7 + $0x260] sm:$0xff] }
 0x106   : > { %v2751_v21 = vpack.c.bf16 %v871_v18, %v869_v17  ;;  %v1218_v17 = vld [vmem:[#allocation8 + $0x248] sm:$0xff]  ;;  %v1220_v18 = vld [vmem:[#allocation8 + $0x258] sm:$0xff] }
 0x108   : > { %2716 = vmatpush1.bf16.msra.mxu0 %v2715_v22  ;;  %v2753_v22 = vpack.c.bf16 %v876_v20, %v874_v19  ;;  %v2785_v20 = vpack.c.bf16 %v1220_v18, %v1218_v17  ;;  %v1254_v17 = vld [vmem:[#allocation8 + $0x368] sm:$0xff]  ;;  %v1256_v18 = vld [vmem:[#allocation8 + $0x378] sm:$0xff] }
 0x109   : > { %2718 = vmatprep.subr.bf16.mxu0 %v2717_v1  ;;  %v873_v1 = vld [vmem:[#allocation7 + $0x280] sm:$0xff] }
 0x10a   : > { %v2755_v25 = vpack.c.bf16 %v875_v4, %v873_v1  ;;  %v1222_v1 = vld [vmem:[#allocation8 + $0x268] sm:$0xff]  ;;  %v1224_v4 = vld [vmem:[#allocation8 + $0x278] sm:$0xff] }
 0x10c   : > { %2720 = vmatpush1.bf16.msra.mxu0 %v2719_v26  ;;  %v2757_v26 = vpack.c.bf16 %v880_v24, %v878_v23  ;;  %v1221_v23 = vld [vmem:[#allocation8 + $0x260] sm:$0xff]  ;;  %v1223_v24 = vld [vmem:[#allocation8 + $0x270] sm:$0xff] }
 0x10d   : > { %2722 = vmatprep.subr.bf16.mxu0 %v2721_v27  ;;  %v877_v27 = vld [vmem:[#allocation7 + $0x2a0] sm:$0xff] }
 0x10e   : > { %v2759_v31 = vpack.c.bf16 %v879_v28, %v877_v27  ;;  %v2791_v27 = vpack.c.bf16 %v1223_v24, %v1221_v23  ;;  %v1257_v23 = vld [vmem:[#allocation8 + $0x380] sm:$0xff]  ;;  %v1259_v24 = vld [vmem:[#allocation8 + $0x390] sm:$0xff] }
 0x110   : > { %2724 = vmatpush1.bf16.msra.mxu0 %v2723_v2  ;;  %v2761_v2 = vpack.c.bf16 %v884_v30, %v882_v29  ;;  %v1225_v29 = vld [vmem:[#allocation8 + $0x280] sm:$0xff]  ;;  %v1230_v30 = vld [vmem:[#allocation8 + $0x2a8] sm:$0xff] }
 0x111   : > { %2726 = vmatprep.subr.bf16.mxu0 %v2725_v5  ;;  %v881_v5 = vld [vmem:[#allocation7 + $0x2c0] sm:$0xff] }
 0x112   : > { %v2763_v35 = vpack.c.bf16 %v883_v32, %v881_v5  ;;  %v1229_v5 = vld [vmem:[#allocation8 + $0x2a0] sm:$0xff]  ;;  %v1231_v32 = vld [vmem:[#allocation8 + $0x2b0] sm:$0xff] }
 0x114   : > { %2728 = vmatpush1.bf16.msra.mxu0 %v2727_v36  ;;  %v2765_v36 = vpack.c.bf16 %v888_v34, %v886_v33  ;;  %v1234_v33 = vld [vmem:[#allocation8 + $0x2c8] sm:$0xff]  ;;  %v1236_v34 = vld [vmem:[#allocation8 + $0x2d8] sm:$0xff] }
 0x115   : > { %2730 = vmatprep.subr.bf16.mxu0 %v2729_v37  ;;  %v885_v37 = vld [vmem:[#allocation7 + $0x2e0] sm:$0xff] }
 0x116   : > { %v2767_v39 = vpack.c.bf16 %v887_v38, %v885_v37  ;;  %v1233_v37 = vld [vmem:[#allocation8 + $0x2c0] sm:$0xff]  ;;  %v1235_v38 = vld [vmem:[#allocation8 + $0x2d0] sm:$0xff] }
 0x118   : > { %2732 = vmatpush1.bf16.msra.mxu0 %v2731_v42  ;;  %v978_v42 = vsub.s32 1, %v3918_v41  ;;  %v3979_v41 = vld [vmem:[#allocation10 + $0x8] sm:$0xff] }
 0x119   : > { %2734 = vmatprep.subr.bf16.mxu0 %v2733_v43  ;;  %v970_v43 = vld [vmem:[%s4067_s3] sm:$0x3] }
 0x11a   : > { %v975_v47 = vrot.slane %v970_v43, %v974_v44 }
 0x11c   : > { %2736 = vmatpush1.bf16.msra.mxu0 %v2735_v46  ;;  %v979_v46 = vrot.slane %v970_v43, %v978_v42  ;;  %v2803_v43 = vpack.c.bf16 %v1235_v38, %v1233_v37  ;;  %v1269_v37 = vld [vmem:[#allocation8 + $0x3e0] sm:$0xff]  ;;  %v1271_v38 = vld [vmem:[#allocation8 + $0x3f0] sm:$0xff] }
 0x11d   : > { %2738 = vmatprep.subr.bf16.mxu0 %v2737_v49 }
 0x1ae   : > { %v2615_v55 = vpop.f32.mrb[0].mxu0 }
 0x1af   : > { %v544_v59 = vpop.f32.mrb[1].mxu0 }
 0x1b0   : > { %844 = vmatmul.mubr.f32.vlgmr.msra.gmra.mrb[4].mxu0 %v544_v59 }
 0x1b1   : > { %2740 = vmatpush1.bf16.msra.mxu0 %v2739_v54  ;;  %849 = vmatprep.mubr.f32.mxu0 %v3525_v0 }
 0x1b2   : > { %2742 = vmatprep.subr.bf16.mxu0 %v2741_v56  ;;  %v2622_v8 = vpop.f32.mrb[2].mxu0  ;;  %v1210_v56 = vld [vmem:[#allocation8 + $0x208] sm:$0xff] }
 0x1b3   : > { %v628_v13 = vpop.f32.mrb[3].mxu0 }
 0x1b4   : > { %850 = vmatmul.mubr.f32.gmra.mrb[6].mxu0 %v2615_v55 }
 0x1b5   : > { %2744 = vmatpush1.bf16.msra.mxu0 %v2743_v62  ;;  %953 = vmatprep.mubr.f32.mxu0 %v3525_v0  ;;  %v2777_v62 = vpack.c.bf16 %v1212_v57, %v1210_v56  ;;  %v1241_v56 = vld [vmem:[#allocation8 + $0x300] sm:$0xff]  ;;  %v1243_v57 = vld [vmem:[#allocation8 + $0x310] sm:$0xff] }
 0x1b6   : > { %2746 = vmatprep.subr.bf16.mxu0 %v2745_v63  ;;  %v1209_v63 = vld [vmem:[#allocation8 + $0x200] sm:$0xff] }
 0x1b7   : > { %v2779_v12 = vpack.c.bf16 %v1211_v6, %v1209_v63  ;;  %v1245_v6 = vld [vmem:[#allocation8 + $0x320] sm:$0xff] }
 0x1b9   : > { %2748 = vmatpush1.bf16.msra.mxu0 %v2747_v14  ;;  %v1213_v14 = vld [vmem:[#allocation8 + $0x220] sm:$0xff] }
 0x1ba   : > { %2750 = vmatprep.subr.bf16.mxu0 %v2749_v15  ;;  %v1215_v15 = vld [vmem:[#allocation8 + $0x230] sm:$0xff] }
 0x1bb   : > { %v2783_v19 = vpack.c.bf16 %v1215_v15, %v1213_v14  ;;  %v1249_v14 = vld [vmem:[#allocation8 + $0x340] sm:$0xff]  ;;  %v1251_v15 = vld [vmem:[#allocation8 + $0x350] sm:$0xff] }
 0x1bd   : > { %2752 = vmatpush1.bf16.msra.mxu0 %v2751_v21  ;;  %v1217_v21 = vld [vmem:[#allocation8 + $0x240] sm:$0xff] }
 0x1be   : > { %2754 = vmatprep.subr.bf16.mxu0 %v2753_v22  ;;  %v1219_v22 = vld [vmem:[#allocation8 + $0x250] sm:$0xff] }
 0x1c1   : > { %2756 = vmatpush1.bf16.msra.mxu0 %v2755_v25  ;;  %v1226_v25 = vld [vmem:[#allocation8 + $0x288] sm:$0xff] }
 0x1c2   : > { %2758 = vmatprep.subr.bf16.mxu0 %v2757_v26  ;;  %v1228_v26 = vld [vmem:[#allocation8 + $0x298] sm:$0xff] }
 0x1c3   : > { %v2793_v28 = vpack.c.bf16 %v1228_v26, %v1226_v25  ;;  %v1262_v25 = vld [vmem:[#allocation8 + $0x3a8] sm:$0xff]  ;;  %v1264_v26 = vld [vmem:[#allocation8 + $0x3b8] sm:$0xff] }
 0x1c5   : > { %2760 = vmatpush1.bf16.msra.mxu0 %v2759_v31  ;;  %v1232_v31 = vld [vmem:[#allocation8 + $0x2b8] sm:$0xff] }
 0x1c6   : > { %2762 = vmatprep.subr.bf16.mxu0 %v2761_v2  ;;  %v2797_v2 = vpack.c.bf16 %v1232_v31, %v1230_v30  ;;  %v1266_v30 = vld [vmem:[#allocation8 + $0x3c8] sm:$0xff]  ;;  %v1268_v31 = vld [vmem:[#allocation8 + $0x3d8] sm:$0xff] }
 0x1c9   : > { %2764 = vmatpush1.bf16.msra.mxu0 %v2763_v35  ;;  %v2799_v35 = vpack.c.bf16 %v1231_v32, %v1229_v5  ;;  %v1265_v5 = vld [vmem:[#allocation8 + $0x3c0] sm:$0xff]  ;;  %v1267_v32 = vld [vmem:[#allocation8 + $0x3d0] sm:$0xff] }
 0x1ca   : > { %2766 = vmatprep.subr.bf16.mxu0 %v2765_v36  ;;  %v2801_v36 = vpack.c.bf16 %v1236_v34, %v1234_v33  ;;  %v1270_v33 = vld [vmem:[#allocation8 + $0x3e8] sm:$0xff]  ;;  %v1272_v34 = vld [vmem:[#allocation8 + $0x3f8] sm:$0xff] }
 0x1cd   : > { %2768 = vmatpush1.bf16.msra.mxu0 %v2767_v39  ;;  %v1238_v39 = vld [vmem:[#allocation8 + $0x2e8] sm:$0xff] }
 0x1d0   : > { %954 = vmatmul.mubr.f32.vlgmr.msra.gmra.mrb[4].mxu0 %v628_v13 }
 0x1d1   : > { %959 = vmatprep.mubr.f32.mxu0 %v3525_v0 }
 0x1d4   : > { %960 = vmatmul.mubr.f32.gmra.mrb[6].mxu0 %v2622_v8  ;;  %v1214_v8 = vld [vmem:[#allocation8 + $0x228] sm:$0xff] }
 0x1d5   : > { %1054 = vmatprep.mubr.f32.mxu0 %v3525_v0  ;;  %v2781_v13 = vpack.c.bf16 %v1216_v11, %v1214_v8  ;;  %v1250_v8 = vld [vmem:[#allocation8 + $0x348] sm:$0xff]  ;;  %v1252_v11 = vld [vmem:[#allocation8 + $0x358] sm:$0xff] }
 0x2a3   : > { %v955_v45 = vpop.f32.mrb[4].mxu0 }
 0x2a4   : > { %v957_v48 = vpop.f32.mrb[5].mxu0  ;;  %v3929_v51 = vadd.f32 %v975_v47, %v955_v45  ;;  %v2805_v45 = vpack.c.bf16 %v1240_v40, %v1238_v39  ;;  %v1145_v39 = vld [vmem:[#allocation8 + $0x8] sm:$0xff]  ;;  %v1147_v40 = vld [vmem:[#allocation8 + $0x18] sm:$0xff] }
 0x2a5   : > { %v983_v49 = vadd.f32 %v979_v46, %v957_v48  ;;  %v1242_v48 = vld [vmem:[#allocation8 + $0x308] sm:$0xff] }
 0x2a6   : > { %v986_v60 = vmax.f32 %v3929_v51, 0.0  ;;  %v1156_v51 = vld [vmem:[#allocation8 + $0x60] sm:$0xff] }
 0x2a7   : > { %v961_v50 = vpop.f32.mrb[6].mxu0  ;;  %v987_v58 = vmax.f32 %v983_v49, 0.0  ;;  %v1244_v49 = vld [vmem:[#allocation8 + $0x318] sm:$0xff] }
 0x2a8   : > { %v3931_v52 = vadd.f32 %v975_v47, %v961_v50  ;;  %v963_v53 = vpop.f32.mrb[7].mxu0  ;;  %v1239_v47 = vld [vmem:[#allocation8 + $0x2f0] sm:$0xff] }
 0x2a9   : > { %v3933_v54 = vadd.f32 %v979_v46, %v963_v53  ;;  %v1237_v46 = vld [vmem:[#allocation8 + $0x2e0] sm:$0xff]  ;;  %v2809_v53 = vpack.c.bf16 %v1244_v49, %v1242_v48  ;;  %v1149_v48 = vld [vmem:[#allocation8 + $0x28] sm:$0xff]  ;;  %v1151_v49 = vld [vmem:[#allocation8 + $0x38] sm:$0xff] }
 0x2aa   : > { %v988_v55 = vmax.f32 %v3931_v52, 0.0  ;;  %v2807_v50 = vpack.c.bf16 %v1239_v47, %v1237_v46  ;;  %v1144_v46 = vld [vmem:[#allocation8] sm:$0xff]  ;;  %v1146_v47 = vld [vmem:[#allocation8 + $0x10] sm:$0xff] }
 0x2ab   : > { %v989_v59 = vmax.f32 %v3933_v54, 0.0  ;;  %v1163_v54 = vld [vmem:[#allocation8 + $0x98] sm:$0xff] }
 0x2ac   : > { %v2771_v7 = vpack.c.bf16 %v988_v55, %v986_v60 }
 0x2ad   : > { %v2769_v61 = vpack.c.bf16 %v989_v59, %v987_v58 }
 0x2af   : > { %2770 = vmatprep.subr.bf16.mxu0 %v2769_v61  ;;  %2774 = vmatprep.subr.bf16.mxu1 %v2769_v61  ;;  %v1248_v61 = vld [vmem:[#allocation8 + $0x338] sm:$0xff] }
 0x2b0   : > { %2772 = vmatpush1.bf16.msra.mxu0 %v2771_v7  ;;  %2776 = vmatpush1.bf16.msra.mxu1 %v2771_v7  ;;  %v1247_v7 = vld [vmem:[#allocation8 + $0x330] sm:$0xff] }
 0x2b1   : > { %2778 = vmatprep.subr.bf16.mxu1 %v2777_v62  ;;  %v2811_v62 = vpack.c.bf16 %v1243_v57, %v1241_v56  ;;  %v1148_v56 = vld [vmem:[#allocation8 + $0x20] sm:$0xff]  ;;  %v1150_v57 = vld [vmem:[#allocation8 + $0x30] sm:$0xff] }
 0x2b3   : > { %2462 = vmatmul.mubr.msk.f32.vlgmr.msra.gmra.mrb[8].mxu0 %vm471_vm0, %v3885_v3  ;;  %2464 = vmatmul.mubr.msk.f32.vlgmr.msra.gmra.mrb[0].mxu1 %vm471_vm0, %v3897_v10  ;;  %v2787_v3 = vpack.c.bf16 %v1219_v22, %v1217_v21  ;;  %v2789_v10 = vpack.c.bf16 %v1224_v4, %v1222_v1  ;;  %v1253_v21 = vld [vmem:[#allocation8 + $0x360] sm:$0xff]  ;;  %v1255_v22 = vld [vmem:[#allocation8 + $0x370] sm:$0xff]  ;;  %v1258_v1 = vld [vmem:[#allocation8 + $0x388] sm:$0xff] }
 0x2b4   : > { %2780 = vmatpush1.bf16.msra.mxu1 %v2779_v12  ;;  %1137 = vmatprep.mubr.f32.mxu1 %v3525_v0  ;;  %v2815_v12 = vpack.c.bf16 %v1247_v7, %v1245_v6  ;;  %v1260_v4 = vld [vmem:[#allocation8 + $0x398] sm:$0xff]  ;;  %v1152_v6 = vld [vmem:[#allocation8 + $0x40] sm:$0xff]  ;;  %v1154_v7 = vld [vmem:[#allocation8 + $0x50] sm:$0xff] }
 0x2b5   : > { %2782 = vmatprep.subr.bf16.mxu1 %v2781_v13  ;;  %1060 = vmatprep.mubr.f32.mxu0 %v3525_v0  ;;  %v2817_v13 = vpack.c.bf16 %v1252_v11, %v1250_v8  ;;  %v1157_v8 = vld [vmem:[#allocation8 + $0x68] sm:$0xff]  ;;  %v1159_v11 = vld [vmem:[#allocation8 + $0x78] sm:$0xff] }
 0x2b7   : > { %2465 = vmatmul.mubr.msk.f32.gmra.mrb[2].mxu1 %vm471_vm0, %v3903_v16  ;;  %2463 = vmatmul.mubr.msk.f32.gmra.mrb[10].mxu0 %vm471_vm0, %v3895_v9  ;;  %v1227_v16 = vld [vmem:[#allocation8 + $0x290] sm:$0xff] }
 0x2b8   : > { %2784 = vmatpush1.bf16.msra.mxu1 %v2783_v19  ;;  %1337 = vmatprep.mubr.f32.mxu1 %v987_v58  ;;  %v2795_v9 = vpack.c.bf16 %v1227_v16, %v1225_v29  ;;  %v1246_v58 = vld [vmem:[#allocation8 + $0x328] sm:$0xff]  ;;  %v2819_v19 = vpack.c.bf16 %v1251_v15, %v1249_v14  ;;  %v1261_v29 = vld [vmem:[#allocation8 + $0x3a0] sm:$0xff]  ;;  %v1263_v16 = vld [vmem:[#allocation8 + $0x3b0] sm:$0xff] }
 0x2b9   : > { %2786 = vmatprep.subr.bf16.mxu1 %v2785_v20  ;;  %1657 = vmatprep.mubr.f32.mxu0 %v3525_v0  ;;  %v2813_v63 = vpack.c.bf16 %v1248_v61, %v1246_v58  ;;  %v2821_v20 = vpack.c.bf16 %v1256_v18, %v1254_v17  ;;  %v1153_v58 = vld [vmem:[#allocation8 + $0x48] sm:$0xff]  ;;  %v1155_v61 = vld [vmem:[#allocation8 + $0x58] sm:$0xff]  ;;  %v1160_v17 = vld [vmem:[#allocation8 + $0x80] sm:$0xff] }
 0x2ba   : > { %v1161_v14 = vld [vmem:[#allocation8 + $0x88] sm:$0xff]  ;;  %v1162_v18 = vld [vmem:[#allocation8 + $0x90] sm:$0xff] }
 0x2bb   : > { %v2857_v15 = vpack.c.bf16 %v1163_v54, %v1161_v14  ;;  %v1201_v14 = vld [vmem:[#allocation8 + $0x1c8] sm:$0xff]  ;;  %v1203_v54 = vld [vmem:[#allocation8 + $0x1d8] sm:$0xff] }
 0x2bc   : > { %2788 = vmatpush1.bf16.msra.mxu1 %v2787_v3  ;;  %v2823_v3 = vpack.c.bf16 %v1255_v22, %v1253_v21  ;;  %v2859_v21 = vpack.c.bf16 %v1162_v18, %v1160_v17  ;;  %v1166_v22 = vld [vmem:[#allocation8 + $0xb0] sm:$0xff]  ;;  %v1200_v17 = vld [vmem:[#allocation8 + $0x1c0] sm:$0xff] }
 0x2bd   : > { %2790 = vmatprep.subr.bf16.mxu1 %v2789_v10  ;;  %v2825_v10 = vpack.c.bf16 %v1260_v4, %v1258_v1  ;;  %v1169_v1 = vld [vmem:[#allocation8 + $0xc8] sm:$0xff]  ;;  %v1171_v4 = vld [vmem:[#allocation8 + $0xd8] sm:$0xff]  ;;  %v1202_v18 = vld [vmem:[#allocation8 + $0x1d0] sm:$0xff] }
 0x2c0   : > { %2792 = vmatpush1.bf16.msra.mxu1 %v2791_v27  ;;  %v2827_v27 = vpack.c.bf16 %v1259_v24, %v1257_v23  ;;  %v1168_v23 = vld [vmem:[#allocation8 + $0xc0] sm:$0xff]  ;;  %v1170_v24 = vld [vmem:[#allocation8 + $0xd0] sm:$0xff] }
 0x2c1   : > { %2794 = vmatprep.subr.bf16.mxu1 %v2793_v28  ;;  %v2829_v28 = vpack.c.bf16 %v1264_v26, %v1262_v25  ;;  %v1173_v25 = vld [vmem:[#allocation8 + $0xe8] sm:$0xff]  ;;  %v1175_v26 = vld [vmem:[#allocation8 + $0xf8] sm:$0xff] }
 0x2c4   : > { %2796 = vmatpush1.bf16.msra.mxu1 %v2795_v9  ;;  %v2831_v9 = vpack.c.bf16 %v1263_v16, %v1261_v29  ;;  %v1172_v29 = vld [vmem:[#allocation8 + $0xe0] sm:$0xff]  ;;  %v1174_v16 = vld [vmem:[#allocation8 + $0xf0] sm:$0xff] }
 0x2c5   : > { %2798 = vmatprep.subr.bf16.mxu1 %v2797_v2  ;;  %v2833_v2 = vpack.c.bf16 %v1268_v31, %v1266_v30  ;;  %v1177_v30 = vld [vmem:[#allocation8 + $0x108] sm:$0xff]  ;;  %v1179_v31 = vld [vmem:[#allocation8 + $0x118] sm:$0xff] }
 0x2c8   : > { %2800 = vmatpush1.bf16.msra.mxu1 %v2799_v35  ;;  %v2835_v35 = vpack.c.bf16 %v1267_v32, %v1265_v5  ;;  %v1176_v5 = vld [vmem:[#allocation8 + $0x100] sm:$0xff]  ;;  %v1178_v32 = vld [vmem:[#allocation8 + $0x110] sm:$0xff] }
 0x2c9   : > { %2802 = vmatprep.subr.bf16.mxu1 %v2801_v36  ;;  %v2837_v36 = vpack.c.bf16 %v1272_v34, %v1270_v33  ;;  %v1181_v33 = vld [vmem:[#allocation8 + $0x128] sm:$0xff]  ;;  %v1183_v34 = vld [vmem:[#allocation8 + $0x138] sm:$0xff] }
 0x2cc   : > { %2804 = vmatpush1.bf16.msra.mxu1 %v2803_v43  ;;  %v2839_v43 = vpack.c.bf16 %v1271_v38, %v1269_v37  ;;  %v1180_v37 = vld [vmem:[#allocation8 + $0x120] sm:$0xff]  ;;  %v1182_v38 = vld [vmem:[#allocation8 + $0x130] sm:$0xff] }
 0x2cd   : > { %2806 = vmatprep.subr.bf16.mxu1 %v2805_v45  ;;  %v2841_v45 = vpack.c.bf16 %v1147_v40, %v1145_v39  ;;  %v1185_v39 = vld [vmem:[#allocation8 + $0x148] sm:$0xff]  ;;  %v1187_v40 = vld [vmem:[#allocation8 + $0x158] sm:$0xff] }
 0x2d0   : > { %2808 = vmatpush1.bf16.msra.mxu1 %v2807_v50  ;;  %v2843_v50 = vpack.c.bf16 %v1146_v47, %v1144_v46  ;;  %v1184_v46 = vld [vmem:[#allocation8 + $0x140] sm:$0xff]  ;;  %v1186_v47 = vld [vmem:[#allocation8 + $0x150] sm:$0xff] }
 0x2d1   : > { %2810 = vmatprep.subr.bf16.mxu1 %v2809_v53  ;;  %v2845_v53 = vpack.c.bf16 %v1151_v49, %v1149_v48  ;;  %v1189_v48 = vld [vmem:[#allocation8 + $0x168] sm:$0xff]  ;;  %v1191_v49 = vld [vmem:[#allocation8 + $0x178] sm:$0xff] }
 0x2d4   : > { %2812 = vmatpush1.bf16.msra.mxu1 %v2811_v62  ;;  %v2847_v62 = vpack.c.bf16 %v1150_v57, %v1148_v56  ;;  %v1188_v56 = vld [vmem:[#allocation8 + $0x160] sm:$0xff]  ;;  %v1190_v57 = vld [vmem:[#allocation8 + $0x170] sm:$0xff] }
 0x2d5   : > { %2814 = vmatprep.subr.bf16.mxu1 %v2813_v63  ;;  %v2849_v63 = vpack.c.bf16 %v1155_v61, %v1153_v58  ;;  %v1193_v58 = vld [vmem:[#allocation8 + $0x188] sm:$0xff]  ;;  %v1195_v61 = vld [vmem:[#allocation8 + $0x198] sm:$0xff] }
 0x2d8   : > { %2816 = vmatpush1.bf16.msra.mxu1 %v2815_v12  ;;  %v2851_v12 = vpack.c.bf16 %v1154_v7, %v1152_v6  ;;  %v1192_v6 = vld [vmem:[#allocation8 + $0x180] sm:$0xff]  ;;  %v1194_v7 = vld [vmem:[#allocation8 + $0x190] sm:$0xff] }
 0x2d9   : > { %2818 = vmatprep.subr.bf16.mxu1 %v2817_v13  ;;  %v2853_v13 = vpack.c.bf16 %v1159_v11, %v1157_v8  ;;  %v1197_v8 = vld [vmem:[#allocation8 + $0x1a8] sm:$0xff]  ;;  %v1199_v11 = vld [vmem:[#allocation8 + $0x1b8] sm:$0xff] }
 0x2dc   : > { %2820 = vmatpush1.bf16.msra.mxu1 %v2819_v19  ;;  %v1165_v19 = vld [vmem:[#allocation8 + $0xa8] sm:$0xff] }
 0x2dd   : > { %2822 = vmatprep.subr.bf16.mxu1 %v2821_v20  ;;  %v1167_v20 = vld [vmem:[#allocation8 + $0xb8] sm:$0xff] }
 0x2de   : > { %v2861_v52 = vpack.c.bf16 %v1167_v20, %v1165_v19  ;;  %v1205_v19 = vld [vmem:[#allocation8 + $0x1e8] sm:$0xff]  ;;  %v1207_v20 = vld [vmem:[#allocation8 + $0x1f8] sm:$0xff] }
 0x2e0   : > { %2824 = vmatpush1.bf16.msra.mxu1 %v2823_v3 }
 0x2e1   : > { %2826 = vmatprep.subr.bf16.mxu1 %v2825_v10  ;;  %v2865_v10 = vpack.c.bf16 %v1171_v4, %v1169_v1  ;;  %v1429_v1 = vld [vmem:[#allocation8 + $0x408] sm:$0xff]  ;;  %v1431_v4 = vld [vmem:[#allocation8 + $0x418] sm:$0xff] }
 0x2e4   : > { %2828 = vmatpush1.bf16.msra.mxu1 %v2827_v27  ;;  %v2867_v27 = vpack.c.bf16 %v1170_v24, %v1168_v23  ;;  %v1428_v23 = vld [vmem:[#allocation8 + $0x400] sm:$0xff]  ;;  %v1430_v24 = vld [vmem:[#allocation8 + $0x410] sm:$0xff] }
 0x2e5   : > { %2830 = vmatprep.subr.bf16.mxu1 %v2829_v28  ;;  %v2869_v28 = vpack.c.bf16 %v1175_v26, %v1173_v25  ;;  %v1433_v25 = vld [vmem:[#allocation8 + $0x428] sm:$0xff]  ;;  %v1435_v26 = vld [vmem:[#allocation8 + $0x438] sm:$0xff] }
 0x2e8   : > { %2832 = vmatpush1.bf16.msra.mxu1 %v2831_v9  ;;  %v2871_v9 = vpack.c.bf16 %v1174_v16, %v1172_v29 }
 0x2e9   : > { %2834 = vmatprep.subr.bf16.mxu1 %v2833_v2  ;;  %v2873_v2 = vpack.c.bf16 %v1179_v31, %v1177_v30  ;;  %v2909_v30 = vpack.c.bf16 %v1435_v26, %v1433_v25  ;;  %v1432_v31 = vld [vmem:[#allocation8 + $0x420] sm:$0xff]  ;;  %v1466_v26 = vld [vmem:[#allocation8 + $0x530] sm:$0xff] }
 0x2ea   : > { %v1464_v25 = vld [vmem:[#allocation8 + $0x520] sm:$0xff] }
 0x2ec   : > { %2836 = vmatpush1.bf16.msra.mxu1 %v2835_v35  ;;  %v2875_v35 = vpack.c.bf16 %v1178_v32, %v1176_v5  ;;  %v1437_v5 = vld [vmem:[#allocation8 + $0x448] sm:$0xff]  ;;  %v1439_v32 = vld [vmem:[#allocation8 + $0x458] sm:$0xff] }
 0x2ed   : > { %2838 = vmatprep.subr.bf16.mxu1 %v2837_v36  ;;  %v2877_v36 = vpack.c.bf16 %v1183_v34, %v1181_v33 }
 0x2f0   : > { %2840 = vmatpush1.bf16.msra.mxu1 %v2839_v43  ;;  %v2879_v43 = vpack.c.bf16 %v1182_v38, %v1180_v37  ;;  %v1436_v37 = vld [vmem:[#allocation8 + $0x440] sm:$0xff]  ;;  %v1438_v38 = vld [vmem:[#allocation8 + $0x450] sm:$0xff] }
 0x2f1   : > { %2842 = vmatprep.subr.bf16.mxu1 %v2841_v45  ;;  %v2881_v45 = vpack.c.bf16 %v1187_v40, %v1185_v39 }
 0x2f3   : > { %1338 = vmatmul.mubr.f32.vlgmr.msra.gmra.mrb[4].mxu1 %v986_v60  ;;  %v1158_v60 = vld [vmem:[#allocation8 + $0x70] sm:$0xff] }
 0x2f4   : > { %1343 = vmatprep.mubr.f32.mxu1 %v989_v59  ;;  %2844 = vmatpush1.bf16.msra.mxu1 %v2843_v50  ;;  %v2855_v59 = vpack.c.bf16 %v1158_v60, %v1156_v51  ;;  %v2883_v50 = vpack.c.bf16 %v1186_v47, %v1184_v46  ;;  %v1196_v51 = vld [vmem:[#allocation8 + $0x1a0] sm:$0xff]  ;;  %v1198_v60 = vld [vmem:[#allocation8 + $0x1b0] sm:$0xff]  ;;  %v2915_v46 = vpack.c.bf16 %v1438_v38, %v1436_v37  ;;  %v1477_v37 = vld [vmem:[#allocation8 + $0x588] sm:$0xff] }
 0x2f5   : > { %2846 = vmatprep.subr.bf16.mxu1 %v2845_v53  ;;  %v2885_v53 = vpack.c.bf16 %v1191_v49, %v1189_v48  ;;  %v1440_v48 = vld [vmem:[#allocation8 + $0x460] sm:$0xff]  ;;  %v1442_v49 = vld [vmem:[#allocation8 + $0x470] sm:$0xff]  ;;  %v1479_v38 = vld [vmem:[#allocation8 + $0x598] sm:$0xff] }
 0x2f7   : > { %1344 = vmatmul.mubr.f32.gmra.mrb[6].mxu1 %v988_v55  ;;  %v1164_v55 = vld [vmem:[#allocation8 + $0xa0] sm:$0xff] }
 0x2f8   : > { %2848 = vmatpush1.bf16.msra.mxu1 %v2847_v62  ;;  %v2863_v3 = vpack.c.bf16 %v1166_v22, %v1164_v55  ;;  %v2887_v62 = vpack.c.bf16 %v1190_v57, %v1188_v56  ;;  %v1204_v55 = vld [vmem:[#allocation8 + $0x1e0] sm:$0xff]  ;;  %v1206_v22 = vld [vmem:[#allocation8 + $0x1f0] sm:$0xff]  ;;  %v2919_v56 = vpack.c.bf16 %v1442_v49, %v1440_v48  ;;  %v1483_v48 = vld [vmem:[#allocation8 + $0x5b8] sm:$0xff] }
 0x2f9   : > { %2850 = vmatprep.subr.bf16.mxu1 %v2849_v63  ;;  %v2889_v63 = vpack.c.bf16 %v1195_v61, %v1193_v58  ;;  %v1444_v58 = vld [vmem:[#allocation8 + $0x480] sm:$0xff]  ;;  %v1446_v61 = vld [vmem:[#allocation8 + $0x490] sm:$0xff] }
 0x2fc   : > { %2852 = vmatpush1.bf16.msra.mxu1 %v2851_v12  ;;  %v2891_v12 = vpack.c.bf16 %v1194_v7, %v1192_v6  ;;  %v2923_v6 = vpack.c.bf16 %v1446_v61, %v1444_v58  ;;  %v1487_v58 = vld [vmem:[#allocation8 + $0x5d8] sm:$0xff] }
 0x2fd   : > { %2854 = vmatprep.subr.bf16.mxu1 %v2853_v13  ;;  %v2893_v13 = vpack.c.bf16 %v1199_v11, %v1197_v8  ;;  %v1448_v8 = vld [vmem:[#allocation8 + $0x4a0] sm:$0xff]  ;;  %v1450_v11 = vld [vmem:[#allocation8 + $0x4b0] sm:$0xff] }
 0x300   : > { %2856 = vmatpush1.bf16.msra.mxu1 %v2855_v59  ;;  %v2895_v59 = vpack.c.bf16 %v1198_v60, %v1196_v51  ;;  %v2927_v51 = vpack.c.bf16 %v1450_v11, %v1448_v8  ;;  %v1491_v8 = vld [vmem:[#allocation8 + $0x5f8] sm:$0xff] }
 0x301   : > { %2858 = vmatprep.subr.bf16.mxu1 %v2857_v15  ;;  %v2897_v15 = vpack.c.bf16 %v1203_v54, %v1201_v14  ;;  %v1452_v14 = vld [vmem:[#allocation8 + $0x4c0] sm:$0xff]  ;;  %v1454_v54 = vld [vmem:[#allocation8 + $0x4d0] sm:$0xff] }
 0x304   : > { %2860 = vmatpush1.bf16.msra.mxu1 %v2859_v21  ;;  %v2899_v21 = vpack.c.bf16 %v1202_v18, %v1200_v17  ;;  %v2931_v17 = vpack.c.bf16 %v1454_v54, %v1452_v14  ;;  %v1573_v14 = vld [vmem:[%s4069_s5] sm:$0x3] }
 0x305   : > { %2862 = vmatprep.subr.bf16.mxu1 %v2861_v52  ;;  %v2901_v52 = vpack.c.bf16 %v1207_v20, %v1205_v19  ;;  %v1456_v19 = vld [vmem:[#allocation8 + $0x4e0] sm:$0xff]  ;;  %v1458_v20 = vld [vmem:[#allocation8 + $0x4f0] sm:$0xff] }
 0x308   : > { %2864 = vmatpush1.bf16.msra.mxu1 %v2863_v3  ;;  %v2903_v3 = vpack.c.bf16 %v1206_v22, %v1204_v55  ;;  %v2935_v55 = vpack.c.bf16 %v1458_v20, %v1456_v19 }
 0x309   : > { %2866 = vmatprep.subr.bf16.mxu1 %v2865_v10  ;;  %v2905_v10 = vpack.c.bf16 %v1431_v4, %v1429_v1  ;;  %v1460_v1 = vld [vmem:[#allocation8 + $0x500] sm:$0xff]  ;;  %v1462_v4 = vld [vmem:[#allocation8 + $0x510] sm:$0xff] }
 0x30c   : > { %2868 = vmatpush1.bf16.msra.mxu1 %v2867_v27 }
 0x30d   : > { %2870 = vmatprep.subr.bf16.mxu1 %v2869_v28  ;;  %v2907_v28 = vpack.c.bf16 %v1430_v24, %v1428_v23  ;;  %v2939_v23 = vpack.c.bf16 %v1462_v4, %v1460_v1  ;;  %v1837_v1 = vld [vmem:[#allocation11 + $0x88] sm:$0xff] }
 0x30e   : > { %v1821_v4 = vld [vmem:[#allocation11 + $0x8] sm:$0xff] }
 0x310   : > { %2872 = vmatpush1.bf16.msra.mxu1 %v2871_v9  ;;  %v1434_v9 = vld [vmem:[#allocation8 + $0x430] sm:$0xff] }
 0x311   : > { %2874 = vmatprep.subr.bf16.mxu1 %v2873_v2  ;;  %v2911_v33 = vpack.c.bf16 %v1434_v9, %v1432_v31  ;;  %v1468_v31 = vld [vmem:[#allocation8 + $0x540] sm:$0xff]  ;;  %v1470_v9 = vld [vmem:[#allocation8 + $0x550] sm:$0xff] }
 0x314   : > { %2876 = vmatpush1.bf16.msra.mxu1 %v2875_v35 }
 0x315   : > { %2878 = vmatprep.subr.bf16.mxu1 %v2877_v36  ;;  %v2913_v36 = vpack.c.bf16 %v1439_v32, %v1437_v5  ;;  %v1475_v5 = vld [vmem:[#allocation8 + $0x578] sm:$0xff]  ;;  %v2947_v32 = vpack.c.bf16 %v1470_v9, %v1468_v31 }
 0x316   : > { %v1824_v9 = vld [vmem:[#allocation11 + $0x20] sm:$0xff] }
 0x318   : > { %2880 = vmatpush1.bf16.msra.mxu1 %v2879_v43  ;;  %v1441_v43 = vld [vmem:[#allocation8 + $0x468] sm:$0xff] }
 0x319   : > { %2882 = vmatprep.subr.bf16.mxu1 %v2881_v45  ;;  %v1443_v45 = vld [vmem:[#allocation8 + $0x478] sm:$0xff] }
 0x31a   : > { %v2917_v47 = vpack.c.bf16 %v1443_v45, %v1441_v43  ;;  %v2953_v43 = vpack.c.bf16 %v1479_v38, %v1477_v37  ;;  %v1476_v45 = vld [vmem:[#allocation8 + $0x580] sm:$0xff]  ;;  %v1827_v37 = vld [vmem:[#allocation11 + $0x38] sm:$0xff]  ;;  %v1844_v38 = vld [vmem:[#allocation11 + $0xc0] sm:$0xff] }
 0x31c   : > { %2884 = vmatpush1.bf16.msra.mxu1 %v2883_v50  ;;  %v1445_v50 = vld [vmem:[#allocation8 + $0x488] sm:$0xff] }
 0x31d   : > { %2886 = vmatprep.subr.bf16.mxu1 %v2885_v53  ;;  %v1447_v53 = vld [vmem:[#allocation8 + $0x498] sm:$0xff] }
 0x31e   : > { %v2921_v57 = vpack.c.bf16 %v1447_v53, %v1445_v50  ;;  %v1480_v53 = vld [vmem:[#allocation8 + $0x5a0] sm:$0xff] }
 0x320   : > { %2888 = vmatpush1.bf16.msra.mxu1 %v2887_v62  ;;  %v1449_v62 = vld [vmem:[#allocation8 + $0x4a8] sm:$0xff] }
 0x321   : > { %2890 = vmatprep.subr.bf16.mxu1 %v2889_v63  ;;  %v1451_v63 = vld [vmem:[#allocation8 + $0x4b8] sm:$0xff] }
 0x322   : > { %v2925_v7 = vpack.c.bf16 %v1451_v63, %v1449_v62  ;;  %v1484_v63 = vld [vmem:[#allocation8 + $0x5c0] sm:$0xff] }
 0x324   : > { %2892 = vmatpush1.bf16.msra.mxu1 %v2891_v12  ;;  %v1453_v12 = vld [vmem:[#allocation8 + $0x4c8] sm:$0xff] }
 0x325   : > { %2894 = vmatprep.subr.bf16.mxu1 %v2893_v13  ;;  %v1455_v13 = vld [vmem:[#allocation8 + $0x4d8] sm:$0xff] }
 0x326   : > { %v2929_v60 = vpack.c.bf16 %v1455_v13, %v1453_v12  ;;  %v1488_v13 = vld [vmem:[#allocation8 + $0x5e0] sm:$0xff] }
 0x328   : > { %2896 = vmatpush1.bf16.msra.mxu1 %v2895_v59  ;;  %v1457_v59 = vld [vmem:[#allocation8 + $0x4e8] sm:$0xff] }
 0x329   : > { %2898 = vmatprep.subr.bf16.mxu1 %v2897_v15  ;;  %v1459_v15 = vld [vmem:[#allocation8 + $0x4f8] sm:$0xff] }
 0x32a   : > { %v2933_v18 = vpack.c.bf16 %v1459_v15, %v1457_v59  ;;  %v1578_v59 = vrot.slane %v1573_v14, %v974_v44  ;;  %v1820_v44 = vld [vmem:[#allocation11] sm:$0xff] }
 0x32c   : > { %2900 = vmatpush1.bf16.msra.mxu1 %v2899_v21  ;;  %v1461_v21 = vld [vmem:[#allocation8 + $0x508] sm:$0xff] }
 0x32d   : > { %2902 = vmatprep.subr.bf16.mxu1 %v2901_v52  ;;  %v1463_v52 = vld [vmem:[#allocation8 + $0x518] sm:$0xff] }
 0x32e   : > { %v2937_v22 = vpack.c.bf16 %v1463_v52, %v1461_v21 }
 0x330   : > { %2904 = vmatpush1.bf16.msra.mxu1 %v2903_v3  ;;  %v1465_v3 = vld [vmem:[#allocation8 + $0x528] sm:$0xff] }
 0x331   : > { %2906 = vmatprep.subr.bf16.mxu1 %v2905_v10  ;;  %v1467_v10 = vld [vmem:[#allocation8 + $0x538] sm:$0xff] }
 0x332   : > { %v2941_v24 = vpack.c.bf16 %v1467_v10, %v1465_v3  ;;  %v1838_v3 = vld [vmem:[#allocation11 + $0x90] sm:$0xff]  ;;  %v1839_v10 = vld [vmem:[#allocation11 + $0x98] sm:$0xff] }
 0x386   : > { %v1056_v27 = vpop.f32.mrb[8].mxu0  ;;  %v3961_v29 = vpop.f32.mrb[0].mxu1 }
 0x387   : > { %v1058_v16 = vpop.f32.mrb[9].mxu0  ;;  %v1135_v2 = vpop.f32.mrb[1].mxu1 }
 0x388   : > { %1414 = vmatprep.mubr.f32.mxu1 %v1058_v16  ;;  %v2943_v16 = vpack.c.bf16 %v1466_v26, %v1464_v25  ;;  %v2985_v25 = vpack.c.bf16 %v1839_v10, %v1838_v3  ;;  %v1822_v26 = vld [vmem:[#allocation11 + $0x10] sm:$0xff] }
 0x389   : > { %1415 = vmatmul.mubr.f32.vlgmr.msra.gmra.mrb[4].mxu1 %v1056_v27  ;;  %v1469_v27 = vld [vmem:[#allocation8 + $0x548] sm:$0xff] }
 0x38a   : > { %2908 = vmatpush1.bf16.msra.mxu1 %v2907_v28  ;;  %v1062_v34 = vpop.f32.mrb[10].mxu0  ;;  %v3963_v35 = vpop.f32.mrb[2].mxu1  ;;  %v1471_v28 = vld [vmem:[#allocation8 + $0x558] sm:$0xff] }
 0x38b   : > { %2910 = vmatprep.subr.bf16.mxu1 %v2909_v30  ;;  %v1064_v39 = vpop.f32.mrb[11].mxu0  ;;  %v3965_v40 = vpop.f32.mrb[3].mxu1  ;;  %v2945_v30 = vpack.c.bf16 %v1471_v28, %v1469_v27  ;;  %v1823_v27 = vld [vmem:[#allocation11 + $0x18] sm:$0xff]  ;;  %v1840_v28 = vld [vmem:[#allocation11 + $0xa0] sm:$0xff] }
 0x38c   : > { %1420 = vmatprep.mubr.f32.mxu1 %v1064_v39 }
 0x38d   : > { %1421 = vmatmul.mubr.f32.gmra.mrb[6].mxu1 %v1062_v34  ;;  %v1472_v34 = vld [vmem:[#allocation8 + $0x560] sm:$0xff] }
 0x38e   : > { %2912 = vmatpush1.bf16.msra.mxu1 %v2911_v33  ;;  %1556 = vmatprep.mubr.f32.mxu1 %v1135_v2  ;;  %v1473_v2 = vld [vmem:[#allocation8 + $0x568] sm:$0xff] }
 0x38f   : > { %2914 = vmatprep.subr.bf16.mxu1 %v2913_v36  ;;  %v2949_v33 = vpack.c.bf16 %v1475_v5, %v1473_v2  ;;  %v1474_v36 = vld [vmem:[#allocation8 + $0x570] sm:$0xff]  ;;  %v1825_v2 = vld [vmem:[#allocation11 + $0x28] sm:$0xff]  ;;  %v1842_v5 = vld [vmem:[#allocation11 + $0xb0] sm:$0xff] }
 0x390   : > { %v2951_v39 = vpack.c.bf16 %v1474_v36, %v1472_v34  ;;  %v1826_v36 = vld [vmem:[#allocation11 + $0x30] sm:$0xff] }
 0x392   : > { %2916 = vmatpush1.bf16.msra.mxu1 %v2915_v46  ;;  %v1478_v46 = vld [vmem:[#allocation8 + $0x590] sm:$0xff] }
 0x393   : > { %2918 = vmatprep.subr.bf16.mxu1 %v2917_v47  ;;  %v1481_v47 = vld [vmem:[#allocation8 + $0x5a8] sm:$0xff]  ;;  %v2955_v49 = vpack.c.bf16 %v1478_v46, %v1476_v45  ;;  %v1828_v46 = vld [vmem:[#allocation11 + $0x40] sm:$0xff] }
 0x394   : > { %v2957_v50 = vpack.c.bf16 %v1483_v48, %v1481_v47  ;;  %v1829_v47 = vld [vmem:[#allocation11 + $0x48] sm:$0xff]  ;;  %v1846_v48 = vld [vmem:[#allocation11 + $0xd0] sm:$0xff] }
 0x396   : > { %2920 = vmatpush1.bf16.msra.mxu1 %v2919_v56  ;;  %v1482_v56 = vld [vmem:[#allocation8 + $0x5b0] sm:$0xff] }
 0x397   : > { %2922 = vmatprep.subr.bf16.mxu1 %v2921_v57  ;;  %v1485_v57 = vld [vmem:[#allocation8 + $0x5c8] sm:$0xff]  ;;  %v2959_v61 = vpack.c.bf16 %v1482_v56, %v1480_v53 }
 0x398   : > { %v2961_v62 = vpack.c.bf16 %v1487_v58, %v1485_v57  ;;  %v1830_v56 = vld [vmem:[#allocation11 + $0x50] sm:$0xff]  ;;  %v1831_v57 = vld [vmem:[#allocation11 + $0x58] sm:$0xff] }
 0x399   : > { %v3003_v58 = vpack.c.bf16 %v1831_v57, %v1830_v56  ;;  %v1952_v56 = vld [vmem:[#allocation11 + $0x1e8] sm:$0xff] }
 0x39a   : > { %2924 = vmatpush1.bf16.msra.mxu1 %v2923_v6  ;;  %v1486_v6 = vld [vmem:[#allocation8 + $0x5d0] sm:$0xff] }
 0x39b   : > { %2926 = vmatprep.subr.bf16.mxu1 %v2925_v7  ;;  %v1489_v7 = vld [vmem:[#allocation8 + $0x5e8] sm:$0xff]  ;;  %v2963_v11 = vpack.c.bf16 %v1486_v6, %v1484_v63  ;;  %v1832_v6 = vld [vmem:[#allocation11 + $0x60] sm:$0xff] }
 0x39c   : > { %v2965_v12 = vpack.c.bf16 %v1491_v8, %v1489_v7  ;;  %v1833_v7 = vld [vmem:[#allocation11 + $0x68] sm:$0xff] }
 0x39d   : > { %v3007_v8 = vpack.c.bf16 %v1833_v7, %v1832_v6  ;;  %v1954_v6 = vld [vmem:[#allocation11 + $0x1f8] sm:$0xff] }
 0x39e   : > { %2928 = vmatpush1.bf16.msra.mxu1 %v2927_v51  ;;  %v1490_v51 = vld [vmem:[#allocation8 + $0x5f0] sm:$0xff] }
 0x39f   : > { %2930 = vmatprep.subr.bf16.mxu1 %v2929_v60  ;;  %v2967_v60 = vpack.c.bf16 %v1490_v51, %v1488_v13  ;;  %v1834_v51 = vld [vmem:[#allocation11 + $0x70] sm:$0xff] }
 0x3a2   : > { %2932 = vmatpush1.bf16.msra.mxu1 %v2931_v17  ;;  %v1582_v17 = vrot.slane %v1573_v14, %v978_v42 }
 0x3a3   : > { %2934 = vmatprep.subr.bf16.mxu1 %v2933_v18 }
 0x3a6   : > { %2936 = vmatpush1.bf16.msra.mxu1 %v2935_v55  ;;  %v1589_v55 = vld [vmem:[#allocation10] sm:$0xff] }
 0x3a7   : > { %2938 = vmatprep.subr.bf16.mxu1 %v2937_v22  ;;  %v1836_v22 = vld [vmem:[#allocation11 + $0x80] sm:$0xff] }
 0x3a8   : > { %v2981_v42 = vpack.c.bf16 %v1837_v1, %v1836_v22  ;;  %v1941_v22 = vld [vmem:[#allocation11 + $0x190] sm:$0xff]  ;;  %v1942_v1 = vld [vmem:[#allocation11 + $0x198] sm:$0xff] }
 0x3a9   : > { %v3017_v10 = vpack.c.bf16 %v1942_v1, %v1941_v22  ;;  %v2031_v22 = vld [vmem:[#allocation11 + $0x220] sm:$0xff]  ;;  %v2032_v1 = vld [vmem:[#allocation11 + $0x228] sm:$0xff] }
 0x3aa   : > { %2940 = vmatpush1.bf16.msra.mxu1 %v2939_v23  ;;  %v1743_v23 = vld [vmem:[#allocation10 + $0x10] sm:$0xff] }
 0x3ab   : > { %2942 = vmatprep.subr.bf16.mxu1 %v2941_v24  ;;  %v2983_v24 = vpack.c.bf16 %v1821_v4, %v1820_v44 }
 0x3ae   : > { %2944 = vmatpush1.bf16.msra.mxu1 %v2943_v16  ;;  %v1841_v16 = vld [vmem:[#allocation11 + $0xa8] sm:$0xff] }
 0x3af   : > { %2946 = vmatprep.subr.bf16.mxu1 %v2945_v30  ;;  %v2987_v30 = vpack.c.bf16 %v1823_v27, %v1822_v26  ;;  %v2989_v31 = vpack.c.bf16 %v1841_v16, %v1840_v28  ;;  %v1944_v26 = vld [vmem:[#allocation11 + $0x1a8] sm:$0xff]  ;;  %v1927_v16 = vld [vmem:[#allocation11 + $0x120] sm:$0xff] }
 0x3b2   : > { %2948 = vmatpush1.bf16.msra.mxu1 %v2947_v32  ;;  %v1843_v32 = vld [vmem:[#allocation11 + $0xb8] sm:$0xff] }
 0x3b3   : > { %2950 = vmatprep.subr.bf16.mxu1 %v2949_v33  ;;  %v2991_v33 = vpack.c.bf16 %v1825_v2, %v1824_v9  ;;  %v2993_v34 = vpack.c.bf16 %v1843_v32, %v1842_v5  ;;  %v1946_v9 = vld [vmem:[#allocation11 + $0x1b8] sm:$0xff]  ;;  %v1929_v32 = vld [vmem:[#allocation11 + $0x130] sm:$0xff] }
 0x3b6   : > { %2952 = vmatpush1.bf16.msra.mxu1 %v2951_v39  ;;  %v1845_v39 = vld [vmem:[#allocation11 + $0xc8] sm:$0xff] }
 0x3b7   : > { %2954 = vmatprep.subr.bf16.mxu1 %v2953_v43  ;;  %v2995_v43 = vpack.c.bf16 %v1827_v37, %v1826_v36  ;;  %v2997_v45 = vpack.c.bf16 %v1845_v39, %v1844_v38  ;;  %v1948_v36 = vld [vmem:[#allocation11 + $0x1c8] sm:$0xff]  ;;  %v1931_v39 = vld [vmem:[#allocation11 + $0x140] sm:$0xff] }
 0x3ba   : > { %2956 = vmatpush1.bf16.msra.mxu1 %v2955_v49  ;;  %v1847_v49 = vld [vmem:[#allocation11 + $0xd8] sm:$0xff] }
 0x3bb   : > { %2958 = vmatprep.subr.bf16.mxu1 %v2957_v50  ;;  %v2999_v50 = vpack.c.bf16 %v1829_v47, %v1828_v46  ;;  %v3001_v53 = vpack.c.bf16 %v1847_v49, %v1846_v48  ;;  %v1950_v46 = vld [vmem:[#allocation11 + $0x1d8] sm:$0xff]  ;;  %v1933_v49 = vld [vmem:[#allocation11 + $0x150] sm:$0xff] }
 0x3be   : > { %2960 = vmatpush1.bf16.msra.mxu1 %v2959_v61  ;;  %v1848_v61 = vld [vmem:[#allocation11 + $0xe0] sm:$0xff] }
 0x3bf   : > { %2962 = vmatprep.subr.bf16.mxu1 %v2961_v62  ;;  %v1849_v62 = vld [vmem:[#allocation11 + $0xe8] sm:$0xff] }
 0x3c0   : > { %v3005_v63 = vpack.c.bf16 %v1849_v62, %v1848_v61  ;;  %v1935_v61 = vld [vmem:[#allocation11 + $0x160] sm:$0xff]  ;;  %v1936_v62 = vld [vmem:[#allocation11 + $0x168] sm:$0xff] }
 0x3c1   : > { %v3039_v7 = vpack.c.bf16 %v1936_v62, %v1935_v61  ;;  %v2200_v61 = vld [vmem:[#allocation13] sm:$0xff]  ;;  %v2201_v62 = vld [vmem:[#allocation13 + $0x8] sm:$0xff] }
 0x3c2   : > { %2964 = vmatpush1.bf16.msra.mxu1 %v2963_v11  ;;  %v1850_v11 = vld [vmem:[#allocation11 + $0xf0] sm:$0xff] }
 0x3c3   : > { %2966 = vmatprep.subr.bf16.mxu1 %v2965_v12  ;;  %v1851_v12 = vld [vmem:[#allocation11 + $0xf8] sm:$0xff] }
 0x3c4   : > { %v3009_v13 = vpack.c.bf16 %v1851_v12, %v1850_v11  ;;  %v1937_v11 = vld [vmem:[#allocation11 + $0x170] sm:$0xff]  ;;  %v1938_v12 = vld [vmem:[#allocation11 + $0x178] sm:$0xff] }
 0x3c6   : > { %2968 = vmatpush1.bf16.msra.mxu1 %v2967_v60  ;;  %v1835_v60 = vld [vmem:[#allocation11 + $0x78] sm:$0xff] }
 0x3c7   : > { %v3011_v14 = vpack.c.bf16 %v1835_v60, %v1834_v51  ;;  %v2044_v51 = vld [vmem:[#allocation11 + $0x288] sm:$0xff]  ;;  %v3043_v60 = vpack.c.bf16 %v1938_v12, %v1937_v11  ;;  %v2204_v11 = vld [vmem:[#allocation13 + $0x20] sm:$0xff] }
 0x3c8   : > { %v2205_v12 = vld [vmem:[#allocation13 + $0x28] sm:$0xff] }
 0x3c9   : > { %1557 = vmatmul.mubr.f32.vlgmr.msra.gmra.mrb[4].mxu1 %v3961_v29 }
 0x3ca   : > { %1562 = vmatprep.mubr.f32.mxu1 %v3965_v40 }
 0x3cd   : > { %1563 = vmatmul.mubr.f32.gmra.mrb[6].mxu1 %v3963_v35 }
 0x3ce   : > { %2662 = vmatprep.mubr.msk.f32.mxu1 %vm3527_vm1, %v3525_v0 }
 0x49c   : > { %v1558_v54 = vpop.f32.mrb[4].mxu1 }
 0x49d   : > { %v1560_v15 = vpop.f32.mrb[5].mxu1  ;;  %v1585_v19 = vadd.f32 %v1578_v59, %v1558_v54  ;;  %v1939_v54 = vld [vmem:[#allocation11 + $0x180] sm:$0xff] }
 0x49e   : > { %v1586_v21 = vadd.f32 %v1582_v17, %v1560_v15 }
 0x4a0   : > { %v1564_v18 = vpop.f32.mrb[6].mxu1 }
 0x4a1   : > { %v1587_v20 = vadd.f32 %v1578_v59, %v1564_v18  ;;  %v1566_v29 = vpop.f32.mrb[7].mxu1  ;;  %v1940_v59 = vld [vmem:[#allocation11 + $0x188] sm:$0xff] }
 0x4a2   : > { %v1588_v40 = vadd.f32 %v1582_v17, %v1566_v29  ;;  %v3013_v15 = vpack.c.bf16 %v1940_v59, %v1939_v54  ;;  %v3526_v17 = vmov 0.0|0.0   ;;  %v2027_v54 = vld [vmem:[#allocation11 + $0x200] sm:$0xff]  ;;  %v2028_v59 = vld [vmem:[#allocation11 + $0x208] sm:$0xff] }
 0x4a3   : > { %v2971_v52 = vpack.c.bf16 %v1587_v20, %v1585_v19  ;;  %3080 = vmatprep.subr.bf16.mxu1 %v3526_v17 }
 0x4a4   : > { %v2969_v35 = vpack.c.bf16 %v1588_v40, %v1586_v21 }
 0x4a6   : > { %2970 = vmatprep.subr.bf16.mxu0 %v2969_v35 }
 0x4a7   : > { %2972 = vmatpush1.bf16.msra.mxu0 %v2971_v52 }
 0x4a8   : > { %2974 = vmatprep.subr.bf16.mxu0 %v2969_v35 }
 0x4aa   : > { %2466 = vmatmul.mubr.msk.f32.vlgmr.msra.gmra.mrb[12].mxu0 %vm471_vm0, %v1589_v55 }
 0x4ab   : > { %2976 = vmatpush1.bf16.msra.mxu0 %v2971_v52  ;;  %1733 = vmatprep.mubr.f32.mxu0 %v3525_v0 }
 0x4ac   : > { %2978 = vmatprep.subr.bf16.mxu0 %v2969_v35  ;;  %v1924_v35 = vld [vmem:[#allocation11 + $0x108] sm:$0xff] }
 0x4ae   : > { %2467 = vmatmul.mubr.msk.f32.vlgmr.msra.gmra.mrb[14].mxu0 %vm471_vm0, %v3979_v41 }
 0x4af   : > { %2980 = vmatpush1.bf16.msra.mxu0 %v2971_v52  ;;  %1811 = vmatprep.mubr.f32.mxu0 %v3525_v0  ;;  %v1923_v52 = vld [vmem:[#allocation11 + $0x100] sm:$0xff] }
 0x4b0   : > { %2982 = vmatprep.subr.bf16.mxu0 %v2981_v42  ;;  %v3015_v3 = vpack.c.bf16 %v1924_v35, %v1923_v52  ;;  %v2048_v52 = vld [vmem:[#allocation11 + $0x2a8] sm:$0xff] }
 0x4b2   : > { %2468 = vmatmul.mubr.msk.f32.vlgmr.msra.gmra.mrb[16].mxu0 %vm471_vm0, %v1743_v23  ;;  %v1925_v23 = vld [vmem:[#allocation11 + $0x110] sm:$0xff] }
 0x4b3   : > { %2984 = vmatpush3.bf16.msra.mxu0 %v2983_v24  ;;  %v1926_v24 = vld [vmem:[#allocation11 + $0x118] sm:$0xff] }
 0x4b4   : > { %2986 = vmatprep.subr.bf16.mxu0 %v2985_v25  ;;  %v1943_v25 = vld [vmem:[#allocation11 + $0x1a0] sm:$0xff]  ;;  %v3019_v27 = vpack.c.bf16 %v1926_v24, %v1925_v23  ;;  %v2033_v24 = vld [vmem:[#allocation11 + $0x230] sm:$0xff] }
 0x4b5   : > { %v3021_v28 = vpack.c.bf16 %v1944_v26, %v1943_v25  ;;  %v2034_v25 = vld [vmem:[#allocation11 + $0x238] sm:$0xff]  ;;  %v2051_v26 = vld [vmem:[#allocation11 + $0x2c0] sm:$0xff] }
 0x4b7   : > { %2988 = vmatpush3.bf16.msra.mxu0 %v2987_v30  ;;  %v1928_v30 = vld [vmem:[#allocation11 + $0x128] sm:$0xff] }
 0x4b8   : > { %2990 = vmatprep.subr.bf16.mxu0 %v2989_v31  ;;  %v1945_v31 = vld [vmem:[#allocation11 + $0x1b0] sm:$0xff]  ;;  %v3023_v2 = vpack.c.bf16 %v1928_v30, %v1927_v16  ;;  %v2036_v30 = vld [vmem:[#allocation11 + $0x248] sm:$0xff] }
 0x4b9   : > { %v3025_v5 = vpack.c.bf16 %v1946_v9, %v1945_v31  ;;  %v2053_v31 = vld [vmem:[#allocation11 + $0x2d0] sm:$0xff]  ;;  %v2054_v9 = vld [vmem:[#allocation11 + $0x2d8] sm:$0xff] }
 0x4bb   : > { %2992 = vmatpush3.bf16.msra.mxu0 %v2991_v33  ;;  %v1930_v33 = vld [vmem:[#allocation11 + $0x138] sm:$0xff] }
 0x4bc   : > { %2994 = vmatprep.subr.bf16.mxu0 %v2993_v34  ;;  %v1947_v34 = vld [vmem:[#allocation11 + $0x1c0] sm:$0xff]  ;;  %v3027_v37 = vpack.c.bf16 %v1930_v33, %v1929_v32  ;;  %v2037_v32 = vld [vmem:[#allocation11 + $0x250] sm:$0xff]  ;;  %v2038_v33 = vld [vmem:[#allocation11 + $0x258] sm:$0xff] }
 0x4bd   : > { %v3029_v38 = vpack.c.bf16 %v1948_v36, %v1947_v34  ;;  %v2055_v34 = vld [vmem:[#allocation11 + $0x2e0] sm:$0xff]  ;;  %v2056_v36 = vld [vmem:[#allocation11 + $0x2e8] sm:$0xff] }
 0x4bf   : > { %2996 = vmatpush3.bf16.msra.mxu0 %v2995_v43  ;;  %v1932_v43 = vld [vmem:[#allocation11 + $0x148] sm:$0xff] }
 0x4c0   : > { %2998 = vmatprep.subr.bf16.mxu0 %v2997_v45  ;;  %v1949_v45 = vld [vmem:[#allocation11 + $0x1d0] sm:$0xff]  ;;  %v3031_v47 = vpack.c.bf16 %v1932_v43, %v1931_v39  ;;  %v2039_v39 = vld [vmem:[#allocation11 + $0x260] sm:$0xff]  ;;  %v2040_v43 = vld [vmem:[#allocation11 + $0x268] sm:$0xff] }
 0x4c1   : > { %v3033_v48 = vpack.c.bf16 %v1950_v46, %v1949_v45  ;;  %v2057_v45 = vld [vmem:[#allocation11 + $0x2f0] sm:$0xff]  ;;  %v2058_v46 = vld [vmem:[#allocation11 + $0x2f8] sm:$0xff] }
 0x4c3   : > { %3000 = vmatpush3.bf16.msra.mxu0 %v2999_v50  ;;  %v1934_v50 = vld [vmem:[#allocation11 + $0x158] sm:$0xff] }
 0x4c4   : > { %3002 = vmatprep.subr.bf16.mxu0 %v3001_v53  ;;  %v1951_v53 = vld [vmem:[#allocation11 + $0x1e0] sm:$0xff]  ;;  %v3035_v57 = vpack.c.bf16 %v1934_v50, %v1933_v49  ;;  %v2041_v49 = vld [vmem:[#allocation11 + $0x270] sm:$0xff]  ;;  %v2042_v50 = vld [vmem:[#allocation11 + $0x278] sm:$0xff] }
 0x4c7   : > { %3004 = vmatpush3.bf16.msra.mxu0 %v3003_v58  ;;  %v3037_v58 = vpack.c.bf16 %v1952_v56, %v1951_v53  ;;  %v3075_v53 = vpack.c.bf16 %v2042_v50, %v2041_v49  ;;  %v3234_v56 = vld [vmem:[%s3860_s24] sm:$0xff] }
 0x4c8   : > { %3006 = vmatprep.subr.bf16.mxu0 %v3005_v63  ;;  %v1953_v63 = vld [vmem:[#allocation11 + $0x1f0] sm:$0xff] }
 0x4cb   : > { %3008 = vmatpush3.bf16.msra.mxu0 %v3007_v8  ;;  %v3041_v8 = vpack.c.bf16 %v1954_v6, %v1953_v63  ;;  %v3081_v63 = vpack.c.bf16 %v2201_v62, %v2200_v61  ;;  %v2202_v6 = vld [vmem:[#allocation13 + $0x10] sm:$0xff] }
 0x4cc   : > { %3010 = vmatprep.subr.bf16.mxu0 %v3009_v13  ;;  %v2043_v13 = vld [vmem:[#allocation11 + $0x280] sm:$0xff] }
 0x4cd   : > { %3082 = vmatpush3.bf16.msra.mxu1 %v3081_v63 }
 0x4ce   : > { %3083 = vmatprep.subr.bf16.mxu1 %v3526_v17 }
 0x4cf   : > { %3012 = vmatpush3.bf16.msra.mxu0 %v3011_v14  ;;  %v3045_v14 = vpack.c.bf16 %v2044_v51, %v2043_v13  ;;  %v2206_v13 = vld [vmem:[#allocation13 + $0x30] sm:$0xff] }
 0x4d0   : > { %3014 = vmatprep.subr.bf16.mxu0 %v3013_v15  ;;  %v2045_v15 = vld [vmem:[#allocation11 + $0x290] sm:$0xff] }
 0x57d   : > { %v1659_v18 = vpop.f32.mrb[12].mxu0 }
 0x57e   : > { %v1661_v19 = vpop.f32.mrb[13].mxu0 }
 0x581   : > { %v1735_v20 = vpop.f32.mrb[14].mxu0 }
 0x582   : > { %v1740_v29 = vmax.f32 %v1659_v18, %v1735_v20  ;;  %v1737_v21 = vpop.f32.mrb[15].mxu0  ;;  %v2046_v18 = vld [vmem:[#allocation11 + $0x298] sm:$0xff] }
 0x583   : > { %v1741_v40 = vmax.f32 %v1661_v19, %v1737_v21  ;;  %v3047_v19 = vpack.c.bf16 %v2028_v59, %v2027_v54  ;;  %v3049_v20 = vpack.c.bf16 %v2046_v18, %v2045_v15  ;;  %v2030_v21 = vld [vmem:[#allocation11 + $0x218] sm:$0xff]  ;;  %v2210_v54 = vld [vmem:[#allocation13 + $0x50] sm:$0xff]  ;;  %v2212_v18 = vld [vmem:[#allocation13 + $0x60] sm:$0xff] }
 0x584   : > { %v2211_v59 = vld [vmem:[#allocation13 + $0x58] sm:$0xff] }
 0x585   : > { %v1813_v55 = vpop.f32.mrb[16].mxu0  ;;  %v3096_v15 = vpack.c.bf16 %v2211_v59, %v2210_v54 }
 0x586   : > { %v3988_v42 = vmax.f32 %v1740_v29, %v1813_v55  ;;  %v1815_v44 = vpop.f32.mrb[17].mxu0  ;;  %v2029_v29 = vld [vmem:[#allocation11 + $0x210] sm:$0xff] }
 0x587   : > { %v3990_v4 = vmax.f32 %v1741_v40, %v1815_v44  ;;  %v2047_v40 = vld [vmem:[#allocation11 + $0x2a0] sm:$0xff]  ;;  %v3051_v35 = vpack.c.bf16 %v2030_v21, %v2029_v29  ;;  %v2049_v44 = vld [vmem:[#allocation11 + $0x2b0] sm:$0xff]  ;;  %v2215_v21 = vld [vmem:[#allocation13 + $0x78] sm:$0xff] }
 0x588   : > { %v3053_v55 = vpack.c.bf16 %v2048_v52, %v2047_v40  ;;  %v2214_v29 = vld [vmem:[#allocation13 + $0x70] sm:$0xff] }
 0x589   : > { %1916 = vmatprep.mubr.f32.mxu0 %v3990_v4  ;;  %v3102_v40 = vpack.c.bf16 %v2215_v21, %v2214_v29 }
 0x58a   : > { %1917 = vmatmul.mubr.f32.vlgmr.msra.gmra.mrb[18].mxu0 %v3988_v42 }
 0x58b   : > { %3016 = vmatpush3.bf16.msra.mxu0 %v3015_v3  ;;  %2019 = vmatprep.mubr.f32.mxu0 %v3990_v4  ;;  %v2050_v3 = vld [vmem:[#allocation11 + $0x2b8] sm:$0xff] }
 0x58c   : > { %3018 = vmatprep.subr.bf16.mxu0 %v3017_v10  ;;  %v3055_v10 = vpack.c.bf16 %v2032_v1, %v2031_v22  ;;  %v3057_v23 = vpack.c.bf16 %v2050_v3, %v2049_v44 }
 0x58f   : > { %3020 = vmatpush3.bf16.msra.mxu0 %v3019_v27  ;;  %v2052_v27 = vld [vmem:[#allocation11 + $0x2c8] sm:$0xff] }
 0x590   : > { %3022 = vmatprep.subr.bf16.mxu0 %v3021_v28  ;;  %v3059_v28 = vpack.c.bf16 %v2034_v25, %v2033_v24  ;;  %v3061_v16 = vpack.c.bf16 %v2052_v27, %v2051_v26 }
 0x593   : > { %3024 = vmatpush3.bf16.msra.mxu0 %v3023_v2 }
 0x594   : > { %3026 = vmatprep.subr.bf16.mxu0 %v3025_v5  ;;  %v3065_v5 = vpack.c.bf16 %v2054_v9, %v2053_v31 }
 0x597   : > { %3028 = vmatpush3.bf16.msra.mxu0 %v3027_v37  ;;  %v3067_v37 = vpack.c.bf16 %v2038_v33, %v2037_v32 }
 0x598   : > { %3030 = vmatprep.subr.bf16.mxu0 %v3029_v38  ;;  %v3069_v38 = vpack.c.bf16 %v2056_v36, %v2055_v34 }
 0x59b   : > { %3032 = vmatpush3.bf16.msra.mxu0 %v3031_v47  ;;  %v3071_v47 = vpack.c.bf16 %v2040_v43, %v2039_v39 }
 0x59c   : > { %3034 = vmatprep.subr.bf16.mxu0 %v3033_v48  ;;  %v3073_v48 = vpack.c.bf16 %v2058_v46, %v2057_v45 }
 0x59f   : > { %3036 = vmatpush3.bf16.msra.mxu0 %v3035_v57  ;;  %v3235_v57 = vld [vmem:[%s3860_s24 + $0x8] sm:$0xff] }
 0x5a0   : > { %3038 = vmatprep.subr.bf16.mxu0 %v3037_v58  ;;  %v3078_v58 = vpack.c.bf16 %v3235_v57, %v3234_v56 }
 0x5a3   : > { %3040 = vmatpush3.bf16.msra.mxu0 %v3039_v7  ;;  %v2203_v7 = vld [vmem:[#allocation13 + $0x18] sm:$0xff] }
 0x5a4   : > { %3042 = vmatprep.subr.bf16.mxu0 %v3041_v8  ;;  %v3084_v8 = vpack.c.bf16 %v2203_v7, %v2202_v6 }
 0x5a6   : > { %3085 = vmatpush3.bf16.msra.mxu1 %v3084_v8 }
 0x5a7   : > { %3044 = vmatpush3.bf16.msra.mxu0 %v3043_v60  ;;  %3086 = vmatprep.subr.bf16.mxu1 %v3526_v17  ;;  %v2209_v60 = vld [vmem:[#allocation13 + $0x48] sm:$0xff] }
 0x5a8   : > { %3046 = vmatprep.subr.bf16.mxu0 %v3045_v14 }
 0x5aa   : > { %2020 = vmatmul.mubr.f32.vlgmr.msra.gmra.mrb[20].mxu0 %v3988_v42 }
 0x5ab   : > { %3048 = vmatpush3.bf16.msra.mxu0 %v3047_v19  ;;  %2123 = vmatprep.mubr.f32.mxu0 %v3990_v4  ;;  %v2035_v4 = vld [vmem:[#allocation11 + $0x240] sm:$0xff]  ;;  %v2213_v19 = vld [vmem:[#allocation13 + $0x68] sm:$0xff] }
 0x5ac   : > { %3050 = vmatprep.subr.bf16.mxu0 %v3049_v20  ;;  %v3063_v2 = vpack.c.bf16 %v2036_v30, %v2035_v4  ;;  %v3099_v20 = vpack.c.bf16 %v2213_v19, %v2212_v18 }
 0x5af   : > { %3052 = vmatpush3.bf16.msra.mxu0 %v3051_v35 }
 0x5b0   : > { %3054 = vmatprep.subr.bf16.mxu0 %v3053_v55 }
 0x5b3   : > { %3056 = vmatpush3.bf16.msra.mxu0 %v3055_v10 }
 0x5b4   : > { %3058 = vmatprep.subr.bf16.mxu0 %v3057_v23 }
 0x5b7   : > { %3060 = vmatpush3.bf16.msra.mxu0 %v3059_v28  ;;  %v2470_v28 = vld [vmem:[%s4108_s25] ss:$0 sm:$0xff] }
 0x5b8   : > { %3062 = vmatprep.subr.bf16.mxu0 %v3061_v16 }
 0x5bb   : > { %3064 = vmatpush3.bf16.msra.mxu0 %v3063_v2 }
 0x5bc   : > { %3066 = vmatprep.subr.bf16.mxu0 %v3065_v5 }
 0x5bf   : > { %3068 = vmatpush3.bf16.msra.mxu0 %v3067_v37 }
 0x5c0   : > { %3070 = vmatprep.subr.bf16.mxu0 %v3069_v38 }
 0x5c3   : > { %3072 = vmatpush3.bf16.msra.mxu0 %v3071_v47 }
 0x5c4   : > { %3074 = vmatprep.subr.bf16.mxu0 %v3073_v48 }
 0x5c7   : > { %3076 = vmatpush3.bf16.msra.mxu0 %v3075_v53 }
 0x5c8   : > { %3077 = vmatprep.subr.bf16.mxu0 %v3526_v17 }
 0x5ca   : > { %2124 = vmatmul.mubr.f32.vlgmr.msra.gmra.mrb[22].mxu0 %v3988_v42  ;;  %v3087_v42 = vpack.c.bf16 %v2205_v12, %v2204_v11 }
 0x5cb   : > { %3079 = vmatpush3.bf16.msra.mxu0 %v3078_v58  ;;  %2627 = vmatprep.mubr.msk.f32.mxu0 %vm3527_vm1, %v3525_v0  ;;  %v2207_v0 = vld [vmem:[#allocation13 + $0x38] sm:$0xff] }
 0x5cc   : > { %3088 = vmatpush3.bf16.msra.mxu1 %v3087_v42  ;;  %v3090_v51 = vpack.c.bf16 %v2207_v0, %v2206_v13 }
 0x5cd   : > { %3089 = vmatprep.subr.bf16.mxu1 %v3526_v17 }
 0x5ce   : > { %2628 = vmatmul.mubr.msk.f32.vlgmr.msra.gmra.mrb[24].mxu0 %vm471_vm0, %v3979_v41  ;;  %v2208_v41 = vld [vmem:[#allocation13 + $0x40] sm:$0xff] }
 0x5cf   : > { %v3093_v14 = vpack.c.bf16 %v2209_v60, %v2208_v41 }
 0x5d0   : > { %3091 = vmatpush3.bf16.msra.mxu1 %v3090_v51 }
 0x5d1   : > { %3092 = vmatprep.subr.bf16.mxu1 %v3526_v17 }
 0x5d4   : > { %3094 = vmatpush3.bf16.msra.mxu1 %v3093_v14 }
 0x5d5   : > { %3095 = vmatprep.subr.bf16.mxu1 %v3526_v17 }
 0x5d8   : > { %3097 = vmatpush3.bf16.msra.mxu1 %v3096_v15 }
 0x5d9   : > { %3098 = vmatprep.subr.bf16.mxu1 %v3526_v17 }
 0x5dc   : > { %3100 = vmatpush3.bf16.msra.mxu1 %v3099_v20 }
 0x5dd   : > { %3101 = vmatprep.subr.bf16.mxu1 %v3526_v17 }
 0x5e0   : > { %3103 = vmatpush3.bf16.msra.mxu1 %v3102_v40 }
 0x65d   : > { %v2516_v52 = vpop.f32.mrb[18].mxu0 }
 0x65e   : > { %v2517_v35 = vpop.f32.mrb[19].mxu0 }
 0x65f   : > { %v2518_v55 = vadd.f32 %v2517_v35, %v2516_v52 }
 0x67d   : > { %v2551_v22 = vpop.f32.mrb[20].mxu0 }
 0x67e   : > { %v2552_v1 = vpop.f32.mrb[21].mxu0 }
 0x67f   : > { %v2553_v44 = vadd.f32 %v2552_v1, %v2551_v22 }
 0x681   : > { %v2025_v3 = vmax.f32 %v2518_v55, %v2553_v44 }
 0x69d   : > { %v2586_v10 = vpop.f32.mrb[22].mxu0 }
 0x69e   : > { %v2587_v23 = vpop.f32.mrb[23].mxu0 }
 0x69f   : > { %v2588_v24 = vadd.f32 %v2587_v23, %v2586_v10 }
 0x6a1   : > { %v2196_v25 = vpop.f32.mrb[24].mxu0  ;;  %v2129_v26 = vmax.f32 %v2025_v3, %v2588_v24 }
 0x6a2   : > { %2663 = vmatmul.mubr.f32.vlgmr.msra.gmra.mrb[8].mxu1 %v2196_v25  ;;  %v2629_v17 = vpop.f32.mrb[25].mxu0 }
 0x775   : > { %v2282_v27 = vpop.f32.mrb[8].mxu1 }
 0x776   : > { %v2286_v16 = vadd.f32 %v2282_v27, %v2129_v26  ;;  %v2664_v4 = vpop.f32.mrb[9].mxu1 }
 0x778   : > { %v2294_v30 = vadd.f32 %v2470_v28, %v2286_v16 }
 0x77a   : > { %2295 = vst [vmem:[%s464_s17] sm:$0xff] %v2294_v30 }
 0x77b   : > { %3447 = shalt.err (!%p3444_p8)
}
 0x77c   : > { %s3448_s12 = scalar_lea.hbm %s4020_s26, 128  ;;  %s3452_s1 = scalar_lea.hbm %s4109_s20, 256 }
 0x77d   : > { %p3449_p7 = scmp.ne.s32.totalorder %s4020_s26, %s3448_s12  ;;  %p3453_p3 = scmp.lt.u32.totalorder %s4020_s26, %s4109_s20 }
 0x77e   : > { %p3454_p0 = scmp.lt.u32.totalorder %s3452_s1, %s3448_s12  ;;  %p3456_p6 = scmp.lt.u32.totalorder %s3448_s12, %s4020_s26 }
 0x77f   : > { %p3450_p9 = pnand %p3449_p7, %p4110_p5 }
 0x780   : > { %p3455_p2 = por %p3454_p0, %p3453_p3 }
 0x781   : > { %p3451_p4 = pneg %p3450_p9 }
 0x782   : > { %p3457_p10 = por %p3456_p6, %p3455_p2 }
 0x784   : > { %p3458_p1 = pnand %p3457_p10, %p3451_p4 }
 0x786   : > { %3461 = shalt.err (!%p3458_p1)
}
 0x787   : > { %3146 = dma.vmem_to_hbm [thread:$0]  (%p4110_p5), %s4022_s21, 128, %s4020_s26, %s2297_s23  }
 0x788 PF: > { %s2322_s24 = sand.u32 1, %s3500_s13   ;;  %p4111_p11 = scmp.ne.s32.totalorder %s4098_s10, 0 }
 0x789   : > { %p4112_p12 = scmp.ge.s32.totalorder %s3512_s16, 2  ;;  %s2323_s28 = scalar_lea.sflag [#allocation4], %s2322_s24 }
 0x78b   : > { %p3172_p13 = pnand %p4112_p12, %p4111_p11 }
 0x78d   : > { %3495 = dma.done.wait (!%p3172_p13), %s2323_s28, 128  }
 0x78e   : > { %3497 = vsyncadd (!%p3172_p13), %s2323_s28, 4294967168  ;;  %p26_p8 = scmp.ge.s32.totalorder %s3774_s11, 4   ;;  %s4113_s13 = smov %s3504_s14 }
 0x78f   : > { %s4114_s14 = smov %s3508_s15  ;;  %s4115_s15 = smov %s3785_s29 }
 0x790   : > { %s4116_s16 = smov %s3774_s11  ;;  %28 = sbr.rel (!%p26_p8) target bundleno = 12 (0xc), region = 138 }
 0x797   :  { %2328 = vsyncpa [#allocation3], 1 }
 0x798   :  { %2330 = vsyncpa [#allocation3 + $0x1], 1 }
 0x799   :  { %2331 = vsyncpa [#allocation6], 1 }
 0x79a   :  { %2332 = vsyncpa [#allocation9], 1 }
 0x79b   :  { %2333 = vsyncpa [#allocation12], 1 }
 0x79c   :  { %2334 = vsyncpa [#allocation4], 1 }
 0x79d   :  { %2336 = vsyncpa [#allocation4 + $0x1], 1 }

</bundles_post_ra>
